<compile_context>
chip_gen: v7x
topology: tpu7x:2x2x1
jax: 0.10.0
libtpu: 0.0.40
codegen_flags: <defaults>
</compile_context>

<pallas_src>
import math

import numpy as np
import jax
import jax.numpy as jnp
from jax.experimental import pallas as pl
from jax.experimental.pallas import tpu as pltpu


def _ru8(n):
    return ((n + 7) // 8) * 8


# ----------------------------------------------------------------------------
# Packed-parameter layout: one (R, LANES) f32 buffer, every block 8-row aligned.
# ----------------------------------------------------------------------------
def _param_layout(input_size, hidden_size, num_layers):
    I, H = input_size, hidden_size
    LANES = max(128, ((4 * H + 127) // 128) * 128)
    off = 0
    wih0 = off; off += _ru8(I)          # (I, 3H)   layer-0 input weights
    bih0 = off; off += 8                # (1, 3H)
    whh0 = off; off += _ru8(H)          # (H, 3H)   layer-0 hidden weights
    bhh0 = off; off += 8                # (1, 3H)
    blk = []
    for _ in range(num_layers - 1):     # upper layers: fused (2H, 4H) block
        w = off; off += _ru8(2 * H)
        b = off; off += 8
        blk.append((w, b))
    whead = off; off += _ru8(H)         # (H, O) head weights (lane-padded)
    bhead = off; off += 8               # (1, O) head bias (-1e30 pad)
    return {"LANES": LANES, "R": _ru8(off), "wih0": wih0, "bih0": bih0,
            "whh0": whh0, "bhh0": bhh0, "blk": blk,
            "whead": whead, "bhead": bhead}


def pack_params(gru_params, head_params, input_size, hidden_size, num_layers):
    """Pack all weights into ONE f32 buffer (single prologue DMA).

    Upper layers are rewritten as a (2H, 4H) block:
      rows 0:H  multiply h_{l-1}(t)   (input side)
      rows H:2H multiply h_l(t-1)     (hidden side)
      cols [0:H]=r_sum  [H:2H]=z_sum  [2H:3H]=gi_n  [3H:4H]=gh_n
    """
    I, H = input_size, hidden_size
    H2, H3, H4 = 2 * H, 3 * H, 4 * H
    lay = _param_layout(I, H, num_layers)
    buf = np.zeros((lay["R"], lay["LANES"]), np.float32)

    wih0, bih0, whh0, bhh0 = [np.asarray(a, np.float32) for a in gru_params[0]]
    buf[lay["wih0"]:lay["wih0"] + I, :H3] = wih0
    buf[lay["bih0"], :H3] = bih0[0]
    buf[lay["whh0"]:lay["whh0"] + H, :H3] = whh0
    buf[lay["bhh0"], :H3] = bhh0[0]

    for l in range(1, num_layers):
        wih, bih, whh, bhh = [np.asarray(a, np.float32) for a in gru_params[l]]
        wo, bo = lay["blk"][l - 1]
        buf[wo:wo + H,       0:H]   = wih[:, 0:H]      # r (input side)
        buf[wo + H:wo + H2,  0:H]   = whh[:, 0:H]      # r (hidden side)
        buf[wo:wo + H,       H:H2]  = wih[:, H:H2]     # z (input side)
        buf[wo + H:wo + H2,  H:H2]  = whh[:, H:H2]     # z (hidden side)
        buf[wo:wo + H,       H2:H3] = wih[:, H2:H3]    # n: gi_n
        buf[wo + H:wo + H2,  H3:H4] = whh[:, H2:H3]    # n: gh_n
        buf[bo, 0:H]   = bih[0, 0:H]  + bhh[0, 0:H]
        buf[bo, H:H2]  = bih[0, H:H2] + bhh[0, H:H2]
        buf[bo, H2:H3] = bih[0, H2:H3]
        buf[bo, H3:H4] = bhh[0, H2:H3]

    w_head, b_head = [np.asarray(a, np.float32) for a in head_params]
    O = w_head.shape[-1]
    buf[lay["whead"]:lay["whead"] + H, :O] = w_head
    buf[lay["bhead"], :O] = b_head[0]
    buf[lay["bhead"], O:] = -1e30    # padded logits vanish in the log-softmax
    return jnp.asarray(buf), lay


# ----------------------------------------------------------------------------
# Fused kernel: [num_layers x GRU] + Linear + LogSoftmax, one pallas_call.
# ----------------------------------------------------------------------------
def make_fused_gru_kernel(T, Bp, I, H, num_layers, lay):
    H2, H3, H4 = 2 * H, 3 * H, 4 * H
    LANES = lay["LANES"]

    def sigm(x):                       # single-EUP sigmoid
        return 0.5 * (jnp.tanh(0.5 * x) + 1.0)

    def kernel(x_ref, p_ref, out_ref):
        x = x_ref[...]                                            # (T*Bp, I)

        # ---- unpack the single packed parameter buffer (static slices) -----
        wih0 = p_ref[lay["wih0"]:lay["wih0"] + I, :]              # (I, LANES)
        bih0 = p_ref[lay["bih0"]:lay["bih0"] + 1, :]              # (1, LANES)
        whh0 = p_ref[lay["whh0"]:lay["whh0"] + H, :]              # (H, LANES)
        bhh0 = jnp.broadcast_to(                                   # hoisted
            p_ref[lay["bhh0"]:lay["bhh0"] + 1, :], (Bp, LANES))
        wblk, bblk = [], []
        for (wo, bo) in lay["blk"]:
            wblk.append(p_ref[wo:wo + H2, :])                     # (2H, LANES)
            bblk.append(jnp.broadcast_to(p_ref[bo:bo + 1, :], (Bp, LANES)))
        w_head = p_ref[lay["whead"]:lay["whead"] + H, :]          # (H, LANES)
        b_head = p_ref[lay["bhead"]:lay["bhead"] + 1, :]          # (1, LANES)

        # ---- hoisted layer-0 input projection: one big MXU matmul ----------
        gi0 = jnp.dot(x, wih0, preferred_element_type=jnp.float32) + bih0

        hs = [jnp.zeros((Bp, H), jnp.float32) for _ in range(num_layers)]

        # Statically unrolled recurrence (T small); only hidden-side / block
        # matmuls remain on the sequential critical path.
        for t in range(T):
            # ---- layer 0 cell ----
            gi = gi0[t * Bp:(t + 1) * Bp, :]
            gh = jnp.dot(hs[0], whh0, preferred_element_type=jnp.float32) + bhh0
            rz = sigm(gi[:, :H2] + gh[:, :H2])
            r, z = rz[:, :H], rz[:, H:H2]
            n = jnp.tanh(gi[:, H2:H3] + r * gh[:, H2:H3])
            hs[0] = (1.0 - z) * n + z * hs[0]

            # ---- upper layers: ONE fused (Bp,2H)@(2H,4H) block matmul ------
            for l in range(1, num_layers):
                u = jnp.concatenate([hs[l - 1], hs[l]], axis=1)   # (Bp, 2H)
                g = jnp.dot(u, wblk[l - 1],
                            preferred_element_type=jnp.float32) + bblk[l - 1]
                rz = sigm(g[:, :H2])
                r, z = rz[:, :H], rz[:, H:H2]
                n = jnp.tanh(g[:, H2:H3] + r * g[:, H3:H4])
                hs[l] = (1.0 - z) * n + z * hs[l]
            # TODO(synk): nn.GRU inter-layer dropout(0.7) skipped (eval mode).

        # ---- fused head: Linear + LogSoftmax(dim=1) on out[-1] --------------
        # Padded logit columns carry a -1e30 bias -> exp() == 0 in the lse.
        y = jnp.dot(hs[-1], w_head, preferred_element_type=jnp.float32) + b_head
        m = jnp.max(y, axis=1, keepdims=True)
        s = y - m
        lse = jnp.log(jnp.sum(jnp.exp(s), axis=1, keepdims=True))
        out_ref[...] = (s - lse).astype(out_ref.dtype)            # (Bp, LANES)

    return kernel


# ----------------------------------------------------------------------------
# Wrapper: pad batch to 8 sublanes, single pallas_call, slice real rows/cols.
# ----------------------------------------------------------------------------
def my_gru_forward(x, packed_params, lay, hidden_size, num_layers, output_size):
    T, B, I = x.shape
    H = hidden_size
    Bp = max(8, _ru8(B))
    if Bp != B:
        x = jnp.pad(x, ((0, 0), (0, Bp - B), (0, 0)))
    x2d = x.reshape(T * Bp, I)

    vmem = pl.BlockSpec(memory_space=pltpu.MemorySpace.VMEM)
    out_padded = pl.pallas_call(
        make_fused_gru_kernel(T, Bp, I, H, num_layers, lay),
        out_shape=jax.ShapeDtypeStruct((Bp, lay["LANES"]), jnp.float32),
        in_specs=[vmem, vmem],
        out_specs=vmem,
    )(x2d, packed_params)

    return out_padded[:B, :output_size]


# ----------------------------------------------------------------------------
# Deterministic PyTorch-style init, gate-concatenated layouts:
#   wih: (in, 3H), whh: (H, 3H), biases: (1, 3H), gate order [r, z, n].
# ----------------------------------------------------------------------------
def init_params(key, input_size, hidden_size, num_layers, output_size):
    k = 1.0 / math.sqrt(hidden_size)
    gru_params = []
    for layer in range(num_layers):
        in_sz = input_size if layer == 0 else hidden_size
        key, k0, k1, k2, k3 = jax.random.split(key, 5)
        wih = jax.random.uniform(k0, (in_sz, 3 * hidden_size), jnp.float32, -k, k)
        bih = jax.random.uniform(k1, (1, 3 * hidden_size), jnp.float32, -k, k)
        whh = jax.random.uniform(k2, (hidden_size, 3 * hidden_size), jnp.float32, -k, k)
        bhh = jax.random.uniform(k3, (1, 3 * hidden_size), jnp.float32, -k, k)
        gru_params.append((wih, bih, whh, bhh))
    key, k0, k1 = jax.random.split(key, 3)
    w_lin = jax.random.uniform(k0, (hidden_size, output_size), jnp.float32, -k, k)
    b_lin = jax.random.uniform(k1, (1, output_size), jnp.float32, -k, k)
    return gru_params, (w_lin, b_lin)


# ----------------------------------------------------------------------------
# Pure-JAX reference (same math, no Pallas) for correctness checking.
# ----------------------------------------------------------------------------
def ref_forward(x, gru_params, head_params):
    T, B, _ = x.shape
    layer_in = x
    for (wih, bih, whh, bhh) in gru_params:
        H = whh.shape[0]
        h = jnp.zeros((B, H), jnp.float32)
        outs = []
        for t in range(T):
            gi = layer_in[t] @ wih + bih
            gh = h @ whh + bhh
            r = jax.nn.sigmoid(gi[:, :H] + gh[:, :H])
            z = jax.nn.sigmoid(gi[:, H:2 * H] + gh[:, H:2 * H])
            n = jnp.tanh(gi[:, 2 * H:] + r * gh[:, 2 * H:])
            h = (1.0 - z) * n + z * h
            outs.append(h)
        layer_in = jnp.stack(outs, axis=0)
    w, b = head_params
    y = layer_in[-1] @ w + b
    return jax.nn.log_softmax(y, axis=1)


if __name__ == "__main__":
    # Small shapes consistent with the module's forward.
    input_size, hidden_size, num_layers, output_size, batch_size = 16, 32, 2, 8, 4
    seq_len = 8

    key = jax.random.PRNGKey(0)
    key, kx = jax.random.split(key)
    x = jax.random.normal(kx, (seq_len, batch_size, input_size), jnp.float32)

    gru_params, head_params = init_params(
        key, input_size, hidden_size, num_layers, output_size
    )
    packed, lay = pack_params(gru_params, head_params,
                              input_size, hidden_size, num_layers)

    fwd = jax.jit(lambda inp: my_gru_forward(
        inp, packed, lay, hidden_size, num_layers, output_size))
    scores = jax.block_until_ready(fwd(x))

    assert scores.shape == (batch_size, output_size)
    # log-softmax rows must exponentiate-sum to ~1
    row_sums = jnp.sum(jnp.exp(scores), axis=1)
    assert bool(jnp.all(jnp.abs(row_sums - 1.0) < 1e-4))

    # match the pure-JAX reference
    ref = ref_forward(x, gru_params, head_params)
    assert bool(jnp.all(jnp.abs(scores - ref) < 2e-4)), "mismatch vs reference"

    print("KERNEL_OK")
</pallas_src>

<mosaic_0001>
module attributes {stable_mosaic.version = 11 : i64} {
  func.func @kernel(%arg0: memref<64x16xf32, #tpu.memory_space<vmem>>, %arg1: memref<176x128xf32, #tpu.memory_space<vmem>>, %arg2: memref<8x128xf32, #tpu.memory_space<vmem>>) attributes {dimension_semantics = [], scalar_prefetch = 0 : i64, scratch_operands = 0 : i64, tpu.core_type = #tpu.core_type<tc>} {
    %c0 = arith.constant 0 : index
    %c0_0 = arith.constant 0 : index
    %0 = vector.load %arg0[%c0, %c0_0] : memref<64x16xf32, #tpu.memory_space<vmem>>, vector<64x16xf32>
    %c0_1 = arith.constant 0 : index
    %c0_2 = arith.constant 0 : index
    %1 = vector.load %arg1[%c0_1, %c0_2] : memref<176x128xf32, #tpu.memory_space<vmem>>, vector<16x128xf32>
    %c16 = arith.constant 16 : index
    %c0_3 = arith.constant 0 : index
    %2 = vector.load %arg1[%c16, %c0_3] : memref<176x128xf32, #tpu.memory_space<vmem>>, vector<1x128xf32>
    %c24 = arith.constant 24 : index
    %c0_4 = arith.constant 0 : index
    %3 = vector.load %arg1[%c24, %c0_4] : memref<176x128xf32, #tpu.memory_space<vmem>>, vector<32x128xf32>
    %c56 = arith.constant 56 : index
    %c0_5 = arith.constant 0 : index
    %4 = vector.load %arg1[%c56, %c0_5] : memref<176x128xf32, #tpu.memory_space<vmem>>, vector<1x128xf32>
    %5 = vector.shape_cast %4 : vector<1x128xf32> to vector<1x128xf32>
    %6 = vector.broadcast %5 : vector<1x128xf32> to vector<8x128xf32>
    %c64 = arith.constant 64 : index
    %c0_6 = arith.constant 0 : index
    %7 = vector.load %arg1[%c64, %c0_6] : memref<176x128xf32, #tpu.memory_space<vmem>>, vector<64x128xf32>
    %c128 = arith.constant 128 : index
    %c0_7 = arith.constant 0 : index
    %8 = vector.load %arg1[%c128, %c0_7] : memref<176x128xf32, #tpu.memory_space<vmem>>, vector<1x128xf32>
    %9 = vector.shape_cast %8 : vector<1x128xf32> to vector<1x128xf32>
    %10 = vector.broadcast %9 : vector<1x128xf32> to vector<8x128xf32>
    %c136 = arith.constant 136 : index
    %c0_8 = arith.constant 0 : index
    %11 = vector.load %arg1[%c136, %c0_8] : memref<176x128xf32, #tpu.memory_space<vmem>>, vector<32x128xf32>
    %c168 = arith.constant 168 : index
    %c0_9 = arith.constant 0 : index
    %12 = vector.load %arg1[%c168, %c0_9] : memref<176x128xf32, #tpu.memory_space<vmem>>, vector<1x128xf32>
    %cst = arith.constant dense<0.000000e+00> : vector<64x128xf32>
    %13 = tpu.matmul %0, %1, %cst {dimension_numbers = #tpu.dot_dimension_numbers<[1], [0], [0], [1], [0, 0, 1, 1], [], []>} : vector<64x16xf32>, vector<16x128xf32>, vector<64x128xf32> -> vector<64x128xf32>
    %14 = vector.broadcast %2 : vector<1x128xf32> to vector<64x128xf32>
    %15 = arith.addf %13, %14 : vector<64x128xf32>
    %cst_10 = arith.constant 0.000000e+00 : f32
    %16 = vector.broadcast %cst_10 : f32 to vector<8x32xf32>
    %cst_11 = arith.constant 0.000000e+00 : f32
    %17 = vector.broadcast %cst_11 : f32 to vector<8x32xf32>
    %18 = vector.extract_strided_slice %15 {offsets = [0, 0], sizes = [8, 128], strides = [1, 1]} : vector<64x128xf32> to vector<8x128xf32>
    %cst_12 = arith.constant dense<0.000000e+00> : vector<8x128xf32>
    %19 = tpu.matmul %16, %3, %cst_12 {dimension_numbers = #tpu.dot_dimension_numbers<[1], [0], [0], [1], [0, 0, 1, 1], [], []>} : vector<8x32xf32>, vector<32x128xf32>, vector<8x128xf32> -> vector<8x128xf32>
    %20 = arith.addf %19, %6 : vector<8x128xf32>
    %21 = vector.extract_strided_slice %18 {offsets = [0, 0], sizes = [8, 64], strides = [1, 1]} : vector<8x128xf32> to vector<8x64xf32>
    %22 = vector.extract_strided_slice %20 {offsets = [0, 0], sizes = [8, 64], strides = [1, 1]} : vector<8x128xf32> to vector<8x64xf32>
    %23 = arith.addf %21, %22 : vector<8x64xf32>
    %cst_13 = arith.constant 5.000000e-01 : f32
    %24 = vector.broadcast %cst_13 : f32 to vector<8x64xf32>
    %25 = arith.mulf %24, %23 : vector<8x64xf32>
    %26 = math.tanh %25 : vector<8x64xf32>
    %cst_14 = arith.constant 1.000000e+00 : f32
    %27 = vector.broadcast %cst_14 : f32 to vector<8x64xf32>
    %28 = arith.addf %26, %27 : vector<8x64xf32>
    %cst_15 = arith.constant 5.000000e-01 : f32
    %29 = vector.broadcast %cst_15 : f32 to vector<8x64xf32>
    %30 = arith.mulf %29, %28 : vector<8x64xf32>
    %31 = vector.extract_strided_slice %30 {offsets = [0, 0], sizes = [8, 32], strides = [1, 1]} : vector<8x64xf32> to vector<8x32xf32>
    %32 = vector.extract_strided_slice %30 {offsets = [0, 32], sizes = [8, 32], strides = [1, 1]} : vector<8x64xf32> to vector<8x32xf32>
    %33 = vector.extract_strided_slice %18 {offsets = [0, 64], sizes = [8, 32], strides = [1, 1]} : vector<8x128xf32> to vector<8x32xf32>
    %34 = vector.extract_strided_slice %20 {offsets = [0, 64], sizes = [8, 32], strides = [1, 1]} : vector<8x128xf32> to vector<8x32xf32>
    %35 = arith.mulf %31, %34 : vector<8x32xf32>
    %36 = arith.addf %33, %35 : vector<8x32xf32>
    %37 = math.tanh %36 : vector<8x32xf32>
    %cst_16 = arith.constant 1.000000e+00 : f32
    %38 = vector.broadcast %cst_16 : f32 to vector<8x32xf32>
    %39 = arith.subf %38, %32 : vector<8x32xf32>
    %40 = arith.mulf %39, %37 : vector<8x32xf32>
    %41 = arith.mulf %32, %16 : vector<8x32xf32>
    %42 = arith.addf %40, %41 : vector<8x32xf32>
    %43 = tpu.concatenate %42, %17 in 1 : vector<8x32xf32>, vector<8x32xf32> -> vector<8x64xf32>
    %cst_17 = arith.constant dense<0.000000e+00> : vector<8x128xf32>
    %44 = tpu.matmul %43, %7, %cst_17 {dimension_numbers = #tpu.dot_dimension_numbers<[1], [0], [0], [1], [0, 0, 1, 1], [], []>} : vector<8x64xf32>, vector<64x128xf32>, vector<8x128xf32> -> vector<8x128xf32>
    %45 = arith.addf %44, %10 : vector<8x128xf32>
    %46 = vector.extract_strided_slice %45 {offsets = [0, 0], sizes = [8, 64], strides = [1, 1]} : vector<8x128xf32> to vector<8x64xf32>
    %cst_18 = arith.constant 5.000000e-01 : f32
    %47 = vector.broadcast %cst_18 : f32 to vector<8x64xf32>
    %48 = arith.mulf %47, %46 : vector<8x64xf32>
    %49 = math.tanh %48 : vector<8x64xf32>
    %cst_19 = arith.constant 1.000000e+00 : f32
    %50 = vector.broadcast %cst_19 : f32 to vector<8x64xf32>
    %51 = arith.addf %49, %50 : vector<8x64xf32>
    %cst_20 = arith.constant 5.000000e-01 : f32
    %52 = vector.broadcast %cst_20 : f32 to vector<8x64xf32>
    %53 = arith.mulf %52, %51 : vector<8x64xf32>
    %54 = vector.extract_strided_slice %53 {offsets = [0, 0], sizes = [8, 32], strides = [1, 1]} : vector<8x64xf32> to vector<8x32xf32>
    %55 = vector.extract_strided_slice %53 {offsets = [0, 32], sizes = [8, 32], strides = [1, 1]} : vector<8x64xf32> to vector<8x32xf32>
    %56 = vector.extract_strided_slice %45 {offsets = [0, 64], sizes = [8, 32], strides = [1, 1]} : vector<8x128xf32> to vector<8x32xf32>
    %57 = vector.extract_strided_slice %45 {offsets = [0, 96], sizes = [8, 32], strides = [1, 1]} : vector<8x128xf32> to vector<8x32xf32>
    %58 = arith.mulf %54, %57 : vector<8x32xf32>
    %59 = arith.addf %56, %58 : vector<8x32xf32>
    %60 = math.tanh %59 : vector<8x32xf32>
    %cst_21 = arith.constant 1.000000e+00 : f32
    %61 = vector.broadcast %cst_21 : f32 to vector<8x32xf32>
    %62 = arith.subf %61, %55 : vector<8x32xf32>
    %63 = arith.mulf %62, %60 : vector<8x32xf32>
    %64 = arith.mulf %55, %17 : vector<8x32xf32>
    %65 = arith.addf %63, %64 : vector<8x32xf32>
    %66 = vector.extract_strided_slice %15 {offsets = [8, 0], sizes = [8, 128], strides = [1, 1]} : vector<64x128xf32> to vector<8x128xf32>
    %cst_22 = arith.constant dense<0.000000e+00> : vector<8x128xf32>
    %67 = tpu.matmul %42, %3, %cst_22 {dimension_numbers = #tpu.dot_dimension_numbers<[1], [0], [0], [1], [0, 0, 1, 1], [], []>} : vector<8x32xf32>, vector<32x128xf32>, vector<8x128xf32> -> vector<8x128xf32>
    %68 = arith.addf %67, %6 : vector<8x128xf32>
    %69 = vector.extract_strided_slice %66 {offsets = [0, 0], sizes = [8, 64], strides = [1, 1]} : vector<8x128xf32> to vector<8x64xf32>
    %70 = vector.extract_strided_slice %68 {offsets = [0, 0], sizes = [8, 64], strides = [1, 1]} : vector<8x128xf32> to vector<8x64xf32>
    %71 = arith.addf %69, %70 : vector<8x64xf32>
    %cst_23 = arith.constant 5.000000e-01 : f32
    %72 = vector.broadcast %cst_23 : f32 to vector<8x64xf32>
    %73 = arith.mulf %72, %71 : vector<8x64xf32>
    %74 = math.tanh %73 : vector<8x64xf32>
    %cst_24 = arith.constant 1.000000e+00 : f32
    %75 = vector.broadcast %cst_24 : f32 to vector<8x64xf32>
    %76 = arith.addf %74, %75 : vector<8x64xf32>
    %cst_25 = arith.constant 5.000000e-01 : f32
    %77 = vector.broadcast %cst_25 : f32 to vector<8x64xf32>
    %78 = arith.mulf %77, %76 : vector<8x64xf32>
    %79 = vector.extract_strided_slice %78 {offsets = [0, 0], sizes = [8, 32], strides = [1, 1]} : vector<8x64xf32> to vector<8x32xf32>
    %80 = vector.extract_strided_slice %78 {offsets = [0, 32], sizes = [8, 32], strides = [1, 1]} : vector<8x64xf32> to vector<8x32xf32>
    %81 = vector.extract_strided_slice %66 {offsets = [0, 64], sizes = [8, 32], strides = [1, 1]} : vector<8x128xf32> to vector<8x32xf32>
    %82 = vector.extract_strided_slice %68 {offsets = [0, 64], sizes = [8, 32], strides = [1, 1]} : vector<8x128xf32> to vector<8x32xf32>
    %83 = arith.mulf %79, %82 : vector<8x32xf32>
    %84 = arith.addf %81, %83 : vector<8x32xf32>
    %85 = math.tanh %84 : vector<8x32xf32>
    %cst_26 = arith.constant 1.000000e+00 : f32
    %86 = vector.broadcast %cst_26 : f32 to vector<8x32xf32>
    %87 = arith.subf %86, %80 : vector<8x32xf32>
    %88 = arith.mulf %87, %85 : vector<8x32xf32>
    %89 = arith.mulf %80, %42 : vector<8x32xf32>
    %90 = arith.addf %88, %89 : vector<8x32xf32>
    %91 = tpu.concatenate %90, %65 in 1 : vector<8x32xf32>, vector<8x32xf32> -> vector<8x64xf32>
    %cst_27 = arith.constant dense<0.000000e+00> : vector<8x128xf32>
    %92 = tpu.matmul %91, %7, %cst_27 {dimension_numbers = #tpu.dot_dimension_numbers<[1], [0], [0], [1], [0, 0, 1, 1], [], []>} : vector<8x64xf32>, vector<64x128xf32>, vector<8x128xf32> -> vector<8x128xf32>
    %93 = arith.addf %92, %10 : vector<8x128xf32>
    %94 = vector.extract_strided_slice %93 {offsets = [0, 0], sizes = [8, 64], strides = [1, 1]} : vector<8x128xf32> to vector<8x64xf32>
    %cst_28 = arith.constant 5.000000e-01 : f32
    %95 = vector.broadcast %cst_28 : f32 to vector<8x64xf32>
    %96 = arith.mulf %95, %94 : vector<8x64xf32>
    %97 = math.tanh %96 : vector<8x64xf32>
    %cst_29 = arith.constant 1.000000e+00 : f32
    %98 = vector.broadcast %cst_29 : f32 to vector<8x64xf32>
    %99 = arith.addf %97, %98 : vector<8x64xf32>
    %cst_30 = arith.constant 5.000000e-01 : f32
    %100 = vector.broadcast %cst_30 : f32 to vector<8x64xf32>
    %101 = arith.mulf %100, %99 : vector<8x64xf32>
    %102 = vector.extract_strided_slice %101 {offsets = [0, 0], sizes = [8, 32], strides = [1, 1]} : vector<8x64xf32> to vector<8x32xf32>
    %103 = vector.extract_strided_slice %101 {offsets = [0, 32], sizes = [8, 32], strides = [1, 1]} : vector<8x64xf32> to vector<8x32xf32>
    %104 = vector.extract_strided_slice %93 {offsets = [0, 64], sizes = [8, 32], strides = [1, 1]} : vector<8x128xf32> to vector<8x32xf32>
    %105 = vector.extract_strided_slice %93 {offsets = [0, 96], sizes = [8, 32], strides = [1, 1]} : vector<8x128xf32> to vector<8x32xf32>
    %106 = arith.mulf %102, %105 : vector<8x32xf32>
    %107 = arith.addf %104, %106 : vector<8x32xf32>
    %108 = math.tanh %107 : vector<8x32xf32>
    %cst_31 = arith.constant 1.000000e+00 : f32
    %109 = vector.broadcast %cst_31 : f32 to vector<8x32xf32>
    %110 = arith.subf %109, %103 : vector<8x32xf32>
    %111 = arith.mulf %110, %108 : vector<8x32xf32>
    %112 = arith.mulf %103, %65 : vector<8x32xf32>
    %113 = arith.addf %111, %112 : vector<8x32xf32>
    %114 = vector.extract_strided_slice %15 {offsets = [16, 0], sizes = [8, 128], strides = [1, 1]} : vector<64x128xf32> to vector<8x128xf32>
    %cst_32 = arith.constant dense<0.000000e+00> : vector<8x128xf32>
    %115 = tpu.matmul %90, %3, %cst_32 {dimension_numbers = #tpu.dot_dimension_numbers<[1], [0], [0], [1], [0, 0, 1, 1], [], []>} : vector<8x32xf32>, vector<32x128xf32>, vector<8x128xf32> -> vector<8x128xf32>
    %116 = arith.addf %115, %6 : vector<8x128xf32>
    %117 = vector.extract_strided_slice %114 {offsets = [0, 0], sizes = [8, 64], strides = [1, 1]} : vector<8x128xf32> to vector<8x64xf32>
    %118 = vector.extract_strided_slice %116 {offsets = [0, 0], sizes = [8, 64], strides = [1, 1]} : vector<8x128xf32> to vector<8x64xf32>
    %119 = arith.addf %117, %118 : vector<8x64xf32>
    %cst_33 = arith.constant 5.000000e-01 : f32
    %120 = vector.broadcast %cst_33 : f32 to vector<8x64xf32>
    %121 = arith.mulf %120, %119 : vector<8x64xf32>
    %122 = math.tanh %121 : vector<8x64xf32>
    %cst_34 = arith.constant 1.000000e+00 : f32
    %123 = vector.broadcast %cst_34 : f32 to vector<8x64xf32>
    %124 = arith.addf %122, %123 : vector<8x64xf32>
    %cst_35 = arith.constant 5.000000e-01 : f32
    %125 = vector.broadcast %cst_35 : f32 to vector<8x64xf32>
    %126 = arith.mulf %125, %124 : vector<8x64xf32>
    %127 = vector.extract_strided_slice %126 {offsets = [0, 0], sizes = [8, 32], strides = [1, 1]} : vector<8x64xf32> to vector<8x32xf32>
    %128 = vector.extract_strided_slice %126 {offsets = [0, 32], sizes = [8, 32], strides = [1, 1]} : vector<8x64xf32> to vector<8x32xf32>
    %129 = vector.extract_strided_slice %114 {offsets = [0, 64], sizes = [8, 32], strides = [1, 1]} : vector<8x128xf32> to vector<8x32xf32>
    %130 = vector.extract_strided_slice %116 {offsets = [0, 64], sizes = [8, 32], strides = [1, 1]} : vector<8x128xf32> to vector<8x32xf32>
    %131 = arith.mulf %127, %130 : vector<8x32xf32>
    %132 = arith.addf %129, %131 : vector<8x32xf32>
    %133 = math.tanh %132 : vector<8x32xf32>
    %cst_36 = arith.constant 1.000000e+00 : f32
    %134 = vector.broadcast %cst_36 : f32 to vector<8x32xf32>
    %135 = arith.subf %134, %128 : vector<8x32xf32>
    %136 = arith.mulf %135, %133 : vector<8x32xf32>
    %137 = arith.mulf %128, %90 : vector<8x32xf32>
    %138 = arith.addf %136, %137 : vector<8x32xf32>
    %139 = tpu.concatenate %138, %113 in 1 : vector<8x32xf32>, vector<8x32xf32> -> vector<8x64xf32>
    %cst_37 = arith.constant dense<0.000000e+00> : vector<8x128xf32>
    %140 = tpu.matmul %139, %7, %cst_37 {dimension_numbers = #tpu.dot_dimension_numbers<[1], [0], [0], [1], [0, 0, 1, 1], [], []>} : vector<8x64xf32>, vector<64x128xf32>, vector<8x128xf32> -> vector<8x128xf32>
    %141 = arith.addf %140, %10 : vector<8x128xf32>
    %142 = vector.extract_strided_slice %141 {offsets = [0, 0], sizes = [8, 64], strides = [1, 1]} : vector<8x128xf32> to vector<8x64xf32>
    %cst_38 = arith.constant 5.000000e-01 : f32
    %143 = vector.broadcast %cst_38 : f32 to vector<8x64xf32>
    %144 = arith.mulf %143, %142 : vector<8x64xf32>
    %145 = math.tanh %144 : vector<8x64xf32>
    %cst_39 = arith.constant 1.000000e+00 : f32
    %146 = vector.broadcast %cst_39 : f32 to vector<8x64xf32>
    %147 = arith.addf %145, %146 : vector<8x64xf32>
    %cst_40 = arith.constant 5.000000e-01 : f32
    %148 = vector.broadcast %cst_40 : f32 to vector<8x64xf32>
    %149 = arith.mulf %148, %147 : vector<8x64xf32>
    %150 = vector.extract_strided_slice %149 {offsets = [0, 0], sizes = [8, 32], strides = [1, 1]} : vector<8x64xf32> to vector<8x32xf32>
    %151 = vector.extract_strided_slice %149 {offsets = [0, 32], sizes = [8, 32], strides = [1, 1]} : vector<8x64xf32> to vector<8x32xf32>
    %152 = vector.extract_strided_slice %141 {offsets = [0, 64], sizes = [8, 32], strides = [1, 1]} : vector<8x128xf32> to vector<8x32xf32>
    %153 = vector.extract_strided_slice %141 {offsets = [0, 96], sizes = [8, 32], strides = [1, 1]} : vector<8x128xf32> to vector<8x32xf32>
    %154 = arith.mulf %150, %153 : vector<8x32xf32>
    %155 = arith.addf %152, %154 : vector<8x32xf32>
    %156 = math.tanh %155 : vector<8x32xf32>
    %cst_41 = arith.constant 1.000000e+00 : f32
    %157 = vector.broadcast %cst_41 : f32 to vector<8x32xf32>
    %158 = arith.subf %157, %151 : vector<8x32xf32>
    %159 = arith.mulf %158, %156 : vector<8x32xf32>
    %160 = arith.mulf %151, %113 : vector<8x32xf32>
    %161 = arith.addf %159, %160 : vector<8x32xf32>
    %162 = vector.extract_strided_slice %15 {offsets = [24, 0], sizes = [8, 128], strides = [1, 1]} : vector<64x128xf32> to vector<8x128xf32>
    %cst_42 = arith.constant dense<0.000000e+00> : vector<8x128xf32>
    %163 = tpu.matmul %138, %3, %cst_42 {dimension_numbers = #tpu.dot_dimension_numbers<[1], [0], [0], [1], [0, 0, 1, 1], [], []>} : vector<8x32xf32>, vector<32x128xf32>, vector<8x128xf32> -> vector<8x128xf32>
    %164 = arith.addf %163, %6 : vector<8x128xf32>
    %165 = vector.extract_strided_slice %162 {offsets = [0, 0], sizes = [8, 64], strides = [1, 1]} : vector<8x128xf32> to vector<8x64xf32>
    %166 = vector.extract_strided_slice %164 {offsets = [0, 0], sizes = [8, 64], strides = [1, 1]} : vector<8x128xf32> to vector<8x64xf32>
    %167 = arith.addf %165, %166 : vector<8x64xf32>
    %cst_43 = arith.constant 5.000000e-01 : f32
    %168 = vector.broadcast %cst_43 : f32 to vector<8x64xf32>
    %169 = arith.mulf %168, %167 : vector<8x64xf32>
    %170 = math.tanh %169 : vector<8x64xf32>
    %cst_44 = arith.constant 1.000000e+00 : f32
    %171 = vector.broadcast %cst_44 : f32 to vector<8x64xf32>
    %172 = arith.addf %170, %171 : vector<8x64xf32>
    %cst_45 = arith.constant 5.000000e-01 : f32
    %173 = vector.broadcast %cst_45 : f32 to vector<8x64xf32>
    %174 = arith.mulf %173, %172 : vector<8x64xf32>
    %175 = vector.extract_strided_slice %174 {offsets = [0, 0], sizes = [8, 32], strides = [1, 1]} : vector<8x64xf32> to vector<8x32xf32>
    %176 = vector.extract_strided_slice %174 {offsets = [0, 32], sizes = [8, 32], strides = [1, 1]} : vector<8x64xf32> to vector<8x32xf32>
    %177 = vector.extract_strided_slice %162 {offsets = [0, 64], sizes = [8, 32], strides = [1, 1]} : vector<8x128xf32> to vector<8x32xf32>
    %178 = vector.extract_strided_slice %164 {offsets = [0, 64], sizes = [8, 32], strides = [1, 1]} : vector<8x128xf32> to vector<8x32xf32>
    %179 = arith.mulf %175, %178 : vector<8x32xf32>
    %180 = arith.addf %177, %179 : vector<8x32xf32>
    %181 = math.tanh %180 : vector<8x32xf32>
    %cst_46 = arith.constant 1.000000e+00 : f32
    %182 = vector.broadcast %cst_46 : f32 to vector<8x32xf32>
    %183 = arith.subf %182, %176 : vector<8x32xf32>
    %184 = arith.mulf %183, %181 : vector<8x32xf32>
    %185 = arith.mulf %176, %138 : vector<8x32xf32>
    %186 = arith.addf %184, %185 : vector<8x32xf32>
    %187 = tpu.concatenate %186, %161 in 1 : vector<8x32xf32>, vector<8x32xf32> -> vector<8x64xf32>
    %cst_47 = arith.constant dense<0.000000e+00> : vector<8x128xf32>
    %188 = tpu.matmul %187, %7, %cst_47 {dimension_numbers = #tpu.dot_dimension_numbers<[1], [0], [0], [1], [0, 0, 1, 1], [], []>} : vector<8x64xf32>, vector<64x128xf32>, vector<8x128xf32> -> vector<8x128xf32>
    %189 = arith.addf %188, %10 : vector<8x128xf32>
    %190 = vector.extract_strided_slice %189 {offsets = [0, 0], sizes = [8, 64], strides = [1, 1]} : vector<8x128xf32> to vector<8x64xf32>
    %cst_48 = arith.constant 5.000000e-01 : f32
    %191 = vector.broadcast %cst_48 : f32 to vector<8x64xf32>
    %192 = arith.mulf %191, %190 : vector<8x64xf32>
    %193 = math.tanh %192 : vector<8x64xf32>
    %cst_49 = arith.constant 1.000000e+00 : f32
    %194 = vector.broadcast %cst_49 : f32 to vector<8x64xf32>
    %195 = arith.addf %193, %194 : vector<8x64xf32>
    %cst_50 = arith.constant 5.000000e-01 : f32
    %196 = vector.broadcast %cst_50 : f32 to vector<8x64xf32>
    %197 = arith.mulf %196, %195 : vector<8x64xf32>
    %198 = vector.extract_strided_slice %197 {offsets = [0, 0], sizes = [8, 32], strides = [1, 1]} : vector<8x64xf32> to vector<8x32xf32>
    %199 = vector.extract_strided_slice %197 {offsets = [0, 32], sizes = [8, 32], strides = [1, 1]} : vector<8x64xf32> to vector<8x32xf32>
    %200 = vector.extract_strided_slice %189 {offsets = [0, 64], sizes = [8, 32], strides = [1, 1]} : vector<8x128xf32> to vector<8x32xf32>
    %201 = vector.extract_strided_slice %189 {offsets = [0, 96], sizes = [8, 32], strides = [1, 1]} : vector<8x128xf32> to vector<8x32xf32>
    %202 = arith.mulf %198, %201 : vector<8x32xf32>
    %203 = arith.addf %200, %202 : vector<8x32xf32>
    %204 = math.tanh %203 : vector<8x32xf32>
    %cst_51 = arith.constant 1.000000e+00 : f32
    %205 = vector.broadcast %cst_51 : f32 to vector<8x32xf32>
    %206 = arith.subf %205, %199 : vector<8x32xf32>
    %207 = arith.mulf %206, %204 : vector<8x32xf32>
    %208 = arith.mulf %199, %161 : vector<8x32xf32>
    %209 = arith.addf %207, %208 : vector<8x32xf32>
    %210 = vector.extract_strided_slice %15 {offsets = [32, 0], sizes = [8, 128], strides = [1, 1]} : vector<64x128xf32> to vector<8x128xf32>
    %cst_52 = arith.constant dense<0.000000e+00> : vector<8x128xf32>
    %211 = tpu.matmul %186, %3, %cst_52 {dimension_numbers = #tpu.dot_dimension_numbers<[1], [0], [0], [1], [0, 0, 1, 1], [], []>} : vector<8x32xf32>, vector<32x128xf32>, vector<8x128xf32> -> vector<8x128xf32>
    %212 = arith.addf %211, %6 : vector<8x128xf32>
    %213 = vector.extract_strided_slice %210 {offsets = [0, 0], sizes = [8, 64], strides = [1, 1]} : vector<8x128xf32> to vector<8x64xf32>
    %214 = vector.extract_strided_slice %212 {offsets = [0, 0], sizes = [8, 64], strides = [1, 1]} : vector<8x128xf32> to vector<8x64xf32>
    %215 = arith.addf %213, %214 : vector<8x64xf32>
    %cst_53 = arith.constant 5.000000e-01 : f32
    %216 = vector.broadcast %cst_53 : f32 to vector<8x64xf32>
    %217 = arith.mulf %216, %215 : vector<8x64xf32>
    %218 = math.tanh %217 : vector<8x64xf32>
    %cst_54 = arith.constant 1.000000e+00 : f32
    %219 = vector.broadcast %cst_54 : f32 to vector<8x64xf32>
    %220 = arith.addf %218, %219 : vector<8x64xf32>
    %cst_55 = arith.constant 5.000000e-01 : f32
    %221 = vector.broadcast %cst_55 : f32 to vector<8x64xf32>
    %222 = arith.mulf %221, %220 : vector<8x64xf32>
    %223 = vector.extract_strided_slice %222 {offsets = [0, 0], sizes = [8, 32], strides = [1, 1]} : vector<8x64xf32> to vector<8x32xf32>
    %224 = vector.extract_strided_slice %222 {offsets = [0, 32], sizes = [8, 32], strides = [1, 1]} : vector<8x64xf32> to vector<8x32xf32>
    %225 = vector.extract_strided_slice %210 {offsets = [0, 64], sizes = [8, 32], strides = [1, 1]} : vector<8x128xf32> to vector<8x32xf32>
    %226 = vector.extract_strided_slice %212 {offsets = [0, 64], sizes = [8, 32], strides = [1, 1]} : vector<8x128xf32> to vector<8x32xf32>
    %227 = arith.mulf %223, %226 : vector<8x32xf32>
    %228 = arith.addf %225, %227 : vector<8x32xf32>
    %229 = math.tanh %228 : vector<8x32xf32>
    %cst_56 = arith.constant 1.000000e+00 : f32
    %230 = vector.broadcast %cst_56 : f32 to vector<8x32xf32>
    %231 = arith.subf %230, %224 : vector<8x32xf32>
    %232 = arith.mulf %231, %229 : vector<8x32xf32>
    %233 = arith.mulf %224, %186 : vector<8x32xf32>
    %234 = arith.addf %232, %233 : vector<8x32xf32>
    %235 = tpu.concatenate %234, %209 in 1 : vector<8x32xf32>, vector<8x32xf32> -> vector<8x64xf32>
    %cst_57 = arith.constant dense<0.000000e+00> : vector<8x128xf32>
    %236 = tpu.matmul %235, %7, %cst_57 {dimension_numbers = #tpu.dot_dimension_numbers<[1], [0], [0], [1], [0, 0, 1, 1], [], []>} : vector<8x64xf32>, vector<64x128xf32>, vector<8x128xf32> -> vector<8x128xf32>
    %237 = arith.addf %236, %10 : vector<8x128xf32>
    %238 = vector.extract_strided_slice %237 {offsets = [0, 0], sizes = [8, 64], strides = [1, 1]} : vector<8x128xf32> to vector<8x64xf32>
    %cst_58 = arith.constant 5.000000e-01 : f32
    %239 = vector.broadcast %cst_58 : f32 to vector<8x64xf32>
    %240 = arith.mulf %239, %238 : vector<8x64xf32>
    %241 = math.tanh %240 : vector<8x64xf32>
    %cst_59 = arith.constant 1.000000e+00 : f32
    %242 = vector.broadcast %cst_59 : f32 to vector<8x64xf32>
    %243 = arith.addf %241, %242 : vector<8x64xf32>
    %cst_60 = arith.constant 5.000000e-01 : f32
    %244 = vector.broadcast %cst_60 : f32 to vector<8x64xf32>
    %245 = arith.mulf %244, %243 : vector<8x64xf32>
    %246 = vector.extract_strided_slice %245 {offsets = [0, 0], sizes = [8, 32], strides = [1, 1]} : vector<8x64xf32> to vector<8x32xf32>
    %247 = vector.extract_strided_slice %245 {offsets = [0, 32], sizes = [8, 32], strides = [1, 1]} : vector<8x64xf32> to vector<8x32xf32>
    %248 = vector.extract_strided_slice %237 {offsets = [0, 64], sizes = [8, 32], strides = [1, 1]} : vector<8x128xf32> to vector<8x32xf32>
    %249 = vector.extract_strided_slice %237 {offsets = [0, 96], sizes = [8, 32], strides = [1, 1]} : vector<8x128xf32> to vector<8x32xf32>
    %250 = arith.mulf %246, %249 : vector<8x32xf32>
    %251 = arith.addf %248, %250 : vector<8x32xf32>
    %252 = math.tanh %251 : vector<8x32xf32>
    %cst_61 = arith.constant 1.000000e+00 : f32
    %253 = vector.broadcast %cst_61 : f32 to vector<8x32xf32>
    %254 = arith.subf %253, %247 : vector<8x32xf32>
    %255 = arith.mulf %254, %252 : vector<8x32xf32>
    %256 = arith.mulf %247, %209 : vector<8x32xf32>
    %257 = arith.addf %255, %256 : vector<8x32xf32>
    %258 = vector.extract_strided_slice %15 {offsets = [40, 0], sizes = [8, 128], strides = [1, 1]} : vector<64x128xf32> to vector<8x128xf32>
    %cst_62 = arith.constant dense<0.000000e+00> : vector<8x128xf32>
    %259 = tpu.matmul %234, %3, %cst_62 {dimension_numbers = #tpu.dot_dimension_numbers<[1], [0], [0], [1], [0, 0, 1, 1], [], []>} : vector<8x32xf32>, vector<32x128xf32>, vector<8x128xf32> -> vector<8x128xf32>
    %260 = arith.addf %259, %6 : vector<8x128xf32>
    %261 = vector.extract_strided_slice %258 {offsets = [0, 0], sizes = [8, 64], strides = [1, 1]} : vector<8x128xf32> to vector<8x64xf32>
    %262 = vector.extract_strided_slice %260 {offsets = [0, 0], sizes = [8, 64], strides = [1, 1]} : vector<8x128xf32> to vector<8x64xf32>
    %263 = arith.addf %261, %262 : vector<8x64xf32>
    %cst_63 = arith.constant 5.000000e-01 : f32
    %264 = vector.broadcast %cst_63 : f32 to vector<8x64xf32>
    %265 = arith.mulf %264, %263 : vector<8x64xf32>
    %266 = math.tanh %265 : vector<8x64xf32>
    %cst_64 = arith.constant 1.000000e+00 : f32
    %267 = vector.broadcast %cst_64 : f32 to vector<8x64xf32>
    %268 = arith.addf %266, %267 : vector<8x64xf32>
    %cst_65 = arith.constant 5.000000e-01 : f32
    %269 = vector.broadcast %cst_65 : f32 to vector<8x64xf32>
    %270 = arith.mulf %269, %268 : vector<8x64xf32>
    %271 = vector.extract_strided_slice %270 {offsets = [0, 0], sizes = [8, 32], strides = [1, 1]} : vector<8x64xf32> to vector<8x32xf32>
    %272 = vector.extract_strided_slice %270 {offsets = [0, 32], sizes = [8, 32], strides = [1, 1]} : vector<8x64xf32> to vector<8x32xf32>
    %273 = vector.extract_strided_slice %258 {offsets = [0, 64], sizes = [8, 32], strides = [1, 1]} : vector<8x128xf32> to vector<8x32xf32>
    %274 = vector.extract_strided_slice %260 {offsets = [0, 64], sizes = [8, 32], strides = [1, 1]} : vector<8x128xf32> to vector<8x32xf32>
    %275 = arith.mulf %271, %274 : vector<8x32xf32>
    %276 = arith.addf %273, %275 : vector<8x32xf32>
    %277 = math.tanh %276 : vector<8x32xf32>
    %cst_66 = arith.constant 1.000000e+00 : f32
    %278 = vector.broadcast %cst_66 : f32 to vector<8x32xf32>
    %279 = arith.subf %278, %272 : vector<8x32xf32>
    %280 = arith.mulf %279, %277 : vector<8x32xf32>
    %281 = arith.mulf %272, %234 : vector<8x32xf32>
    %282 = arith.addf %280, %281 : vector<8x32xf32>
    %283 = tpu.concatenate %282, %257 in 1 : vector<8x32xf32>, vector<8x32xf32> -> vector<8x64xf32>
    %cst_67 = arith.constant dense<0.000000e+00> : vector<8x128xf32>
    %284 = tpu.matmul %283, %7, %cst_67 {dimension_numbers = #tpu.dot_dimension_numbers<[1], [0], [0], [1], [0, 0, 1, 1], [], []>} : vector<8x64xf32>, vector<64x128xf32>, vector<8x128xf32> -> vector<8x128xf32>
    %285 = arith.addf %284, %10 : vector<8x128xf32>
    %286 = vector.extract_strided_slice %285 {offsets = [0, 0], sizes = [8, 64], strides = [1, 1]} : vector<8x128xf32> to vector<8x64xf32>
    %cst_68 = arith.constant 5.000000e-01 : f32
    %287 = vector.broadcast %cst_68 : f32 to vector<8x64xf32>
    %288 = arith.mulf %287, %286 : vector<8x64xf32>
    %289 = math.tanh %288 : vector<8x64xf32>
    %cst_69 = arith.constant 1.000000e+00 : f32
    %290 = vector.broadcast %cst_69 : f32 to vector<8x64xf32>
    %291 = arith.addf %289, %290 : vector<8x64xf32>
    %cst_70 = arith.constant 5.000000e-01 : f32
    %292 = vector.broadcast %cst_70 : f32 to vector<8x64xf32>
    %293 = arith.mulf %292, %291 : vector<8x64xf32>
    %294 = vector.extract_strided_slice %293 {offsets = [0, 0], sizes = [8, 32], strides = [1, 1]} : vector<8x64xf32> to vector<8x32xf32>
    %295 = vector.extract_strided_slice %293 {offsets = [0, 32], sizes = [8, 32], strides = [1, 1]} : vector<8x64xf32> to vector<8x32xf32>
    %296 = vector.extract_strided_slice %285 {offsets = [0, 64], sizes = [8, 32], strides = [1, 1]} : vector<8x128xf32> to vector<8x32xf32>
    %297 = vector.extract_strided_slice %285 {offsets = [0, 96], sizes = [8, 32], strides = [1, 1]} : vector<8x128xf32> to vector<8x32xf32>
    %298 = arith.mulf %294, %297 : vector<8x32xf32>
    %299 = arith.addf %296, %298 : vector<8x32xf32>
    %300 = math.tanh %299 : vector<8x32xf32>
    %cst_71 = arith.constant 1.000000e+00 : f32
    %301 = vector.broadcast %cst_71 : f32 to vector<8x32xf32>
    %302 = arith.subf %301, %295 : vector<8x32xf32>
    %303 = arith.mulf %302, %300 : vector<8x32xf32>
    %304 = arith.mulf %295, %257 : vector<8x32xf32>
    %305 = arith.addf %303, %304 : vector<8x32xf32>
    %306 = vector.extract_strided_slice %15 {offsets = [48, 0], sizes = [8, 128], strides = [1, 1]} : vector<64x128xf32> to vector<8x128xf32>
    %cst_72 = arith.constant dense<0.000000e+00> : vector<8x128xf32>
    %307 = tpu.matmul %282, %3, %cst_72 {dimension_numbers = #tpu.dot_dimension_numbers<[1], [0], [0], [1], [0, 0, 1, 1], [], []>} : vector<8x32xf32>, vector<32x128xf32>, vector<8x128xf32> -> vector<8x128xf32>
    %308 = arith.addf %307, %6 : vector<8x128xf32>
    %309 = vector.extract_strided_slice %306 {offsets = [0, 0], sizes = [8, 64], strides = [1, 1]} : vector<8x128xf32> to vector<8x64xf32>
    %310 = vector.extract_strided_slice %308 {offsets = [0, 0], sizes = [8, 64], strides = [1, 1]} : vector<8x128xf32> to vector<8x64xf32>
    %311 = arith.addf %309, %310 : vector<8x64xf32>
    %cst_73 = arith.constant 5.000000e-01 : f32
    %312 = vector.broadcast %cst_73 : f32 to vector<8x64xf32>
    %313 = arith.mulf %312, %311 : vector<8x64xf32>
    %314 = math.tanh %313 : vector<8x64xf32>
    %cst_74 = arith.constant 1.000000e+00 : f32
    %315 = vector.broadcast %cst_74 : f32 to vector<8x64xf32>
    %316 = arith.addf %314, %315 : vector<8x64xf32>
    %cst_75 = arith.constant 5.000000e-01 : f32
    %317 = vector.broadcast %cst_75 : f32 to vector<8x64xf32>
    %318 = arith.mulf %317, %316 : vector<8x64xf32>
    %319 = vector.extract_strided_slice %318 {offsets = [0, 0], sizes = [8, 32], strides = [1, 1]} : vector<8x64xf32> to vector<8x32xf32>
    %320 = vector.extract_strided_slice %318 {offsets = [0, 32], sizes = [8, 32], strides = [1, 1]} : vector<8x64xf32> to vector<8x32xf32>
    %321 = vector.extract_strided_slice %306 {offsets = [0, 64], sizes = [8, 32], strides = [1, 1]} : vector<8x128xf32> to vector<8x32xf32>
    %322 = vector.extract_strided_slice %308 {offsets = [0, 64], sizes = [8, 32], strides = [1, 1]} : vector<8x128xf32> to vector<8x32xf32>
    %323 = arith.mulf %319, %322 : vector<8x32xf32>
    %324 = arith.addf %321, %323 : vector<8x32xf32>
    %325 = math.tanh %324 : vector<8x32xf32>
    %cst_76 = arith.constant 1.000000e+00 : f32
    %326 = vector.broadcast %cst_76 : f32 to vector<8x32xf32>
    %327 = arith.subf %326, %320 : vector<8x32xf32>
    %328 = arith.mulf %327, %325 : vector<8x32xf32>
    %329 = arith.mulf %320, %282 : vector<8x32xf32>
    %330 = arith.addf %328, %329 : vector<8x32xf32>
    %331 = tpu.concatenate %330, %305 in 1 : vector<8x32xf32>, vector<8x32xf32> -> vector<8x64xf32>
    %cst_77 = arith.constant dense<0.000000e+00> : vector<8x128xf32>
    %332 = tpu.matmul %331, %7, %cst_77 {dimension_numbers = #tpu.dot_dimension_numbers<[1], [0], [0], [1], [0, 0, 1, 1], [], []>} : vector<8x64xf32>, vector<64x128xf32>, vector<8x128xf32> -> vector<8x128xf32>
    %333 = arith.addf %332, %10 : vector<8x128xf32>
    %334 = vector.extract_strided_slice %333 {offsets = [0, 0], sizes = [8, 64], strides = [1, 1]} : vector<8x128xf32> to vector<8x64xf32>
    %cst_78 = arith.constant 5.000000e-01 : f32
    %335 = vector.broadcast %cst_78 : f32 to vector<8x64xf32>
    %336 = arith.mulf %335, %334 : vector<8x64xf32>
    %337 = math.tanh %336 : vector<8x64xf32>
    %cst_79 = arith.constant 1.000000e+00 : f32
    %338 = vector.broadcast %cst_79 : f32 to vector<8x64xf32>
    %339 = arith.addf %337, %338 : vector<8x64xf32>
    %cst_80 = arith.constant 5.000000e-01 : f32
    %340 = vector.broadcast %cst_80 : f32 to vector<8x64xf32>
    %341 = arith.mulf %340, %339 : vector<8x64xf32>
    %342 = vector.extract_strided_slice %341 {offsets = [0, 0], sizes = [8, 32], strides = [1, 1]} : vector<8x64xf32> to vector<8x32xf32>
    %343 = vector.extract_strided_slice %341 {offsets = [0, 32], sizes = [8, 32], strides = [1, 1]} : vector<8x64xf32> to vector<8x32xf32>
    %344 = vector.extract_strided_slice %333 {offsets = [0, 64], sizes = [8, 32], strides = [1, 1]} : vector<8x128xf32> to vector<8x32xf32>
    %345 = vector.extract_strided_slice %333 {offsets = [0, 96], sizes = [8, 32], strides = [1, 1]} : vector<8x128xf32> to vector<8x32xf32>
    %346 = arith.mulf %342, %345 : vector<8x32xf32>
    %347 = arith.addf %344, %346 : vector<8x32xf32>
    %348 = math.tanh %347 : vector<8x32xf32>
    %cst_81 = arith.constant 1.000000e+00 : f32
    %349 = vector.broadcast %cst_81 : f32 to vector<8x32xf32>
    %350 = arith.subf %349, %343 : vector<8x32xf32>
    %351 = arith.mulf %350, %348 : vector<8x32xf32>
    %352 = arith.mulf %343, %305 : vector<8x32xf32>
    %353 = arith.addf %351, %352 : vector<8x32xf32>
    %354 = vector.extract_strided_slice %15 {offsets = [56, 0], sizes = [8, 128], strides = [1, 1]} : vector<64x128xf32> to vector<8x128xf32>
    %cst_82 = arith.constant dense<0.000000e+00> : vector<8x128xf32>
    %355 = tpu.matmul %330, %3, %cst_82 {dimension_numbers = #tpu.dot_dimension_numbers<[1], [0], [0], [1], [0, 0, 1, 1], [], []>} : vector<8x32xf32>, vector<32x128xf32>, vector<8x128xf32> -> vector<8x128xf32>
    %356 = arith.addf %355, %6 : vector<8x128xf32>
    %357 = vector.extract_strided_slice %354 {offsets = [0, 0], sizes = [8, 64], strides = [1, 1]} : vector<8x128xf32> to vector<8x64xf32>
    %358 = vector.extract_strided_slice %356 {offsets = [0, 0], sizes = [8, 64], strides = [1, 1]} : vector<8x128xf32> to vector<8x64xf32>
    %359 = arith.addf %357, %358 : vector<8x64xf32>
    %cst_83 = arith.constant 5.000000e-01 : f32
    %360 = vector.broadcast %cst_83 : f32 to vector<8x64xf32>
    %361 = arith.mulf %360, %359 : vector<8x64xf32>
    %362 = math.tanh %361 : vector<8x64xf32>
    %cst_84 = arith.constant 1.000000e+00 : f32
    %363 = vector.broadcast %cst_84 : f32 to vector<8x64xf32>
    %364 = arith.addf %362, %363 : vector<8x64xf32>
    %cst_85 = arith.constant 5.000000e-01 : f32
    %365 = vector.broadcast %cst_85 : f32 to vector<8x64xf32>
    %366 = arith.mulf %365, %364 : vector<8x64xf32>
    %367 = vector.extract_strided_slice %366 {offsets = [0, 0], sizes = [8, 32], strides = [1, 1]} : vector<8x64xf32> to vector<8x32xf32>
    %368 = vector.extract_strided_slice %366 {offsets = [0, 32], sizes = [8, 32], strides = [1, 1]} : vector<8x64xf32> to vector<8x32xf32>
    %369 = vector.extract_strided_slice %354 {offsets = [0, 64], sizes = [8, 32], strides = [1, 1]} : vector<8x128xf32> to vector<8x32xf32>
    %370 = vector.extract_strided_slice %356 {offsets = [0, 64], sizes = [8, 32], strides = [1, 1]} : vector<8x128xf32> to vector<8x32xf32>
    %371 = arith.mulf %367, %370 : vector<8x32xf32>
    %372 = arith.addf %369, %371 : vector<8x32xf32>
    %373 = math.tanh %372 : vector<8x32xf32>
    %cst_86 = arith.constant 1.000000e+00 : f32
    %374 = vector.broadcast %cst_86 : f32 to vector<8x32xf32>
    %375 = arith.subf %374, %368 : vector<8x32xf32>
    %376 = arith.mulf %375, %373 : vector<8x32xf32>
    %377 = arith.mulf %368, %330 : vector<8x32xf32>
    %378 = arith.addf %376, %377 : vector<8x32xf32>
    %379 = tpu.concatenate %378, %353 in 1 : vector<8x32xf32>, vector<8x32xf32> -> vector<8x64xf32>
    %cst_87 = arith.constant dense<0.000000e+00> : vector<8x128xf32>
    %380 = tpu.matmul %379, %7, %cst_87 {dimension_numbers = #tpu.dot_dimension_numbers<[1], [0], [0], [1], [0, 0, 1, 1], [], []>} : vector<8x64xf32>, vector<64x128xf32>, vector<8x128xf32> -> vector<8x128xf32>
    %381 = arith.addf %380, %10 : vector<8x128xf32>
    %382 = vector.extract_strided_slice %381 {offsets = [0, 0], sizes = [8, 64], strides = [1, 1]} : vector<8x128xf32> to vector<8x64xf32>
    %cst_88 = arith.constant 5.000000e-01 : f32
    %383 = vector.broadcast %cst_88 : f32 to vector<8x64xf32>
    %384 = arith.mulf %383, %382 : vector<8x64xf32>
    %385 = math.tanh %384 : vector<8x64xf32>
    %cst_89 = arith.constant 1.000000e+00 : f32
    %386 = vector.broadcast %cst_89 : f32 to vector<8x64xf32>
    %387 = arith.addf %385, %386 : vector<8x64xf32>
    %cst_90 = arith.constant 5.000000e-01 : f32
    %388 = vector.broadcast %cst_90 : f32 to vector<8x64xf32>
    %389 = arith.mulf %388, %387 : vector<8x64xf32>
    %390 = vector.extract_strided_slice %389 {offsets = [0, 0], sizes = [8, 32], strides = [1, 1]} : vector<8x64xf32> to vector<8x32xf32>
    %391 = vector.extract_strided_slice %389 {offsets = [0, 32], sizes = [8, 32], strides = [1, 1]} : vector<8x64xf32> to vector<8x32xf32>
    %392 = vector.extract_strided_slice %381 {offsets = [0, 64], sizes = [8, 32], strides = [1, 1]} : vector<8x128xf32> to vector<8x32xf32>
    %393 = vector.extract_strided_slice %381 {offsets = [0, 96], sizes = [8, 32], strides = [1, 1]} : vector<8x128xf32> to vector<8x32xf32>
    %394 = arith.mulf %390, %393 : vector<8x32xf32>
    %395 = arith.addf %392, %394 : vector<8x32xf32>
    %396 = math.tanh %395 : vector<8x32xf32>
    %cst_91 = arith.constant 1.000000e+00 : f32
    %397 = vector.broadcast %cst_91 : f32 to vector<8x32xf32>
    %398 = arith.subf %397, %391 : vector<8x32xf32>
    %399 = arith.mulf %398, %396 : vector<8x32xf32>
    %400 = arith.mulf %391, %353 : vector<8x32xf32>
    %401 = arith.addf %399, %400 : vector<8x32xf32>
    %cst_92 = arith.constant dense<0.000000e+00> : vector<8x128xf32>
    %402 = tpu.matmul %401, %11, %cst_92 {dimension_numbers = #tpu.dot_dimension_numbers<[1], [0], [0], [1], [0, 0, 1, 1], [], []>} : vector<8x32xf32>, vector<32x128xf32>, vector<8x128xf32> -> vector<8x128xf32>
    %403 = vector.broadcast %12 : vector<1x128xf32> to vector<8x128xf32>
    %404 = arith.addf %402, %403 : vector<8x128xf32>
    %cst_93 = arith.constant dense<0xFF800000> : vector<8xf32>
    %405 = vector.multi_reduction <maximumf>, %404, %cst_93 [1] : vector<8x128xf32> to vector<8xf32>
    %406 = vector.shape_cast %405 : vector<8xf32> to vector<8x1xf32>
    %407 = vector.broadcast %406 : vector<8x1xf32> to vector<8x128xf32>
    %408 = arith.subf %404, %407 : vector<8x128xf32>
    %409 = math.exp %408 : vector<8x128xf32>
    %cst_94 = arith.constant dense<0.000000e+00> : vector<8xf32>
    %410 = vector.multi_reduction <add>, %409, %cst_94 [1] : vector<8x128xf32> to vector<8xf32>
    %411 = vector.shape_cast %410 : vector<8xf32> to vector<8x1xf32>
    %412 = math.log %411 : vector<8x1xf32>
    %413 = vector.broadcast %412 : vector<8x1xf32> to vector<8x128xf32>
    %414 = arith.subf %408, %413 : vector<8x128xf32>
    %c0_95 = arith.constant 0 : index
    %c0_96 = arith.constant 0 : index
    %415 = vector.load %arg2[%c0_95, %c0_96] : memref<8x128xf32, #tpu.memory_space<vmem>>, vector<8x128xf32>
    tpu.vector_store %arg2[%c0_95, %c0_96], %414 {strides = array<i32>} : memref<8x128xf32, #tpu.memory_space<vmem>>, vector<8x128xf32>,
    return
  }
}

</mosaic_0001>

<bundles_post_ra>
// kernel: _lambda_.1
= control target key start
LH: loop header
LB: loop body
LE: loop exit
PB: predicated region body
PF: predicated region fallthrough
CT: control target
= control target key end

     0   :  { %7 = vsyncpa [#allocation3], 0  ;;  %s2548_s9 = smov [#allocation2]   ;;  %s2916_s0 = inlined_call_operand.vmem [shape: f32[64,16], index: 0, kind: input, shape index: {}]   ;;  %s2917_s1 = inlined_call_operand.hbm [shape: f32[176,128], index: 1, kind: input, shape index: {}]   ;;  %s2918_s2 = inlined_call_operand.vmem [shape: f32[8,128], index: 2, kind: output, shape index: {}]  }
   0x1   :  { %s15_s10 = sshll.u32 %s2548_s9, 4  ;;  %s2524_s13 = scalar_lea.hbm %s2917_s1, 2816  ;;  %s16_s10 = int_to_ptr.vmem [resolvable:$true] %s15_s10 }
   0x2   :  { %p2525_p0 = scmp.ne.s32.totalorder %s2917_s1, %s2524_s13  ;;  %p2528_p1 = scmp.lt.u32.totalorder %s2524_s13, %s2917_s1 }
   0x4   :  { %p2530_p2 = pnand %p2528_p1, %p2525_p0 }
   0x6   :  { %2533 = shalt.err (!%p2530_p2)
}
   0x7   :  { %s2534_s18 = scalar_lea.vmem %s16_s10, 2816  ;;  %p2539_p4 = scmp.lt.s32.totalorder %s16_s10, %s16_s10 }
   0x8   :  { %p2535_p3 = scmp.ne.s32.totalorder %s16_s10, %s2534_s18  ;;  %p2540_p5 = scmp.lt.s32.totalorder %s2534_s18, %s2534_s18 }
   0xa   :  { %p2541_p6 = por %p2540_p5, %p2539_p4 }
   0xc   :  { %p2542_p7 = pnand %p2541_p6, %p2535_p3 }
   0xe   :  { %2545 = shalt.err (!%p2542_p7)
}
   0xf   :  { %s2549_s19 = smov 128   ;;  %s2550_s20 = smov 8  }
  0x10   :  { %21 = dma.hbm_to_vmem [thread:$0]  %s2917_s1, 2816, %s16_s10, [#allocation3], %s2549_s19, %s2549_s19, %s2550_s20  }
  0x11   :  { %2546 = dma.done.wait [#allocation3], 2816  }
  0x12   :  { %2547 = vsyncadd [#allocation3], 4294964480  ;;  %v2551_v0 = vmov 0.0|0.0   ;;  %vm2552_vm0 = vmmov 0   ;;  %v2553_v1 = vmov 0.0   ;;  %v36_v2 = vld [vmem:[#allocation2 + $0x18] sm:$0xff] }
  0x13   :  { %2297 = vmatprep.subr.bf16.mxu1 %v2551_v0  ;;  %2050 = vmatprep.mubr.msk.f32.mxu1 %vm2552_vm0, %v2553_v1  ;;  %v37_v3 = vld [vmem:[#allocation2 + $0x20] sm:$0xff]  ;;  %vm67_vm1 = vcmask 130048   ;;  %v34_v6 = vld [vmem:[#allocation2 + $0x8] sm:$0xff]  ;;  %v39_v8 = vld [vmem:[#allocation2 + $0x30] sm:$0xff]  ;;  %s2554_s26 = smov 64   ;;  %s2555_s11 = smov 96  }
  0x14   :  { %v33_v4 = vld [vmem:[#allocation2] sm:$0xff]  ;;  %v2587_v5 = vpack.c.bf16 %v37_v3, %v36_v2  ;;  %v38_v7 = vld [vmem:[#allocation2 + $0x28] sm:$0xff]  ;;  %v2613_v14 = vld [vmem:[#allocation2 + $0x38] ss:$0 sm:$0xff]  ;;  %vm197_vm2 = vcmask 261120   ;;  %vm300_vm3 = vcmask 523264  }
  0x15   :  { %v2293_v9 = vpack.c.bf16 %v34_v6, %v33_v4  ;;  %v25_v10 = vld [vmem:[%s2916_s0] sm:$0xff]  ;;  %v2593_v11 = vpack.c.bf16 %v39_v8, %v38_v7  ;;  %v26_v12 = vld [vmem:[%s2916_s0 + $0x8] sm:$0xff]  ;;  %v2617_v19 = vld [vmem:[#allocation2 + $0x10] ss:$0 sm:$0xff] }
  0x16   :  { %2299 = vmatpush3.bf16.msra.mxu1 %v2587_v5  ;;  %2030 = vmatprep.mubr.msk.f32.mxu0 %vm67_vm1, %v25_v10  ;;  %v45_v30 = vld [vmem:[#allocation2 + $0x40] sm:$0xff]  ;;  %v46_v31 = vld [vmem:[#allocation2 + $0x48] sm:$0xff]  ;;  %v27_v32 = vld [vmem:[%s2916_s0 + $0x10] sm:$0xff] }
  0x17   :  { %2294 = vmatprep.subr.bf16.mxu0 %v2293_v9  ;;  %2300 = vmatprep.subr.bf16.mxu1 %v2551_v0  ;;  %v2624_v33 = vpack.c.bf16 %v46_v31, %v45_v30  ;;  %v28_v34 = vld [vmem:[%s2916_s0 + $0x18] sm:$0xff]  ;;  %v47_v35 = vld [vmem:[#allocation2 + $0x50] sm:$0xff]  ;;  %v29_v37 = vld [vmem:[%s2916_s0 + $0x20] sm:$0xff] }
  0x18   :  { %2296 = vmatpush3.bf16.msra.mxu0 %v2293_v9  ;;  %v48_v36 = vld [vmem:[#allocation2 + $0x58] sm:$0xff]  ;;  %v30_v39 = vld [vmem:[%s2916_s0 + $0x28] sm:$0xff]  ;;  %v49_v40 = vld [vmem:[#allocation2 + $0x60] sm:$0xff] }
  0x19   :  { %2303 = vmatprep.subr.bf16.mxu0 %v2551_v0  ;;  %v2635_v38 = vpack.c.bf16 %v48_v36, %v47_v35  ;;  %v50_v41 = vld [vmem:[#allocation2 + $0x68] sm:$0xff]  ;;  %v31_v42 = vld [vmem:[%s2916_s0 + $0x30] sm:$0xff]  ;;  %v32_v44 = vld [vmem:[%s2916_s0 + $0x38] sm:$0xff]  ;;  %s2556_s0 = smov 32  }
  0x1a   :  { %2302 = vmatpush3.bf16.msra.mxu1 %v2593_v11  ;;  %v2647_v43 = vpack.c.bf16 %v50_v41, %v49_v40  ;;  %v51_v46 = vld [vmem:[#allocation2 + $0x70] sm:$0xff]  ;;  %v52_v47 = vld [vmem:[#allocation2 + $0x78] sm:$0xff] }
  0x1b   :  { %2031 = vmatmul.mubr.msk.f32.vlgmr.msra.gmra.mrb[0].mxu0 %vm67_vm1, %v26_v12  ;;  %2315 = vmatprep.subr.bf16.mxu1 %v2551_v0  ;;  %v2657_v48 = vpack.c.bf16 %v52_v47, %v51_v46 }
  0x1c   :  { %2033 = vmatprep.mubr.msk.f32.mxu0 %vm67_vm1, %v27_v32  ;;  %2305 = vmatpush3.bf16.msra.mxu0 %v2624_v33 }
  0x1d   :  { %2051 = vmatmul.mubr.f32.vlgmr.msra.gmra.mrb[0].mxu1 %v2553_v1  ;;  %2306 = vmatprep.subr.bf16.mxu0 %v2551_v0 }
  0x1e   :  { %2317 = vmatpush3.bf16.msra.mxu1 %v2587_v5  ;;  %2080 = vmatprep.mubr.msk.f32.mxu1 %vm2552_vm0, %v2553_v1 }
  0x1f   :  { %2318 = vmatprep.subr.bf16.mxu1 %v2551_v0  ;;  %2034 = vmatmul.mubr.msk.f32.gmra.mrb[2].mxu0 %vm67_vm1, %v28_v34 }
  0x20   :  { %2036 = vmatprep.mubr.msk.f32.mxu0 %vm67_vm1, %v29_v37  ;;  %2308 = vmatpush3.bf16.msra.mxu0 %v2635_v38 }
  0x21   :  { %2309 = vmatprep.subr.bf16.mxu0 %v2551_v0 }
  0x22   :  { %2320 = vmatpush3.bf16.msra.mxu1 %v2593_v11 }
  0x23   :  { %2321 = vmatprep.subr.bf16.mxu1 %v2551_v0  ;;  %2037 = vmatmul.mubr.msk.f32.gmra.mrb[4].mxu0 %vm67_vm1, %v30_v39 }
  0x24   :  { %2039 = vmatprep.mubr.msk.f32.mxu0 %vm67_vm1, %v31_v42  ;;  %2311 = vmatpush3.bf16.msra.mxu0 %v2647_v43 }
  0x25   :  { %2312 = vmatprep.subr.bf16.mxu0 %v2551_v0 }
  0x27   :  { %2040 = vmatmul.mubr.msk.f32.gmra.mrb[6].mxu0 %vm67_vm1, %v32_v44 }
  0x28   :  { %2069 = vmatprep.mubr.msk.f32.mxu0 %vm2552_vm0, %v2553_v1  ;;  %2314 = vmatpush3.bf16.msra.mxu0 %v2657_v48 }
  0x29   :  { %2333 = vmatprep.subr.bf16.mxu0 %v2551_v0 }
  0xee   :  { %v2611_v13 = vpop.f32.mrb[0].mxu0 }
  0xef   :  { %v158_v15 = vpop.f32.mrb[1].mxu0  ;;  %v164_v6 = vadd.f32 %v2611_v13, %v2617_v19 }
  0xf0   :  { %v267_v16 = vpop.f32.mrb[0].mxu1  ;;  %v159_v20 = vadd.f32 %v2617_v19, %v158_v15 }
  0xf1   :  { %v268_v17 = vadd.f32 %v2613_v14, %v267_v16  ;;  %v2052_v18 = vpop.f32.mrb[1].mxu1 }
  0xf2   :  { %v2665_v54 = vpop.f32.mrb[2].mxu0 }
  0xf3   :  { %277 = vrot.lane.b32.xlu0 %v268_v17, %s2554_s26  ;;  %v271_v21 = vadd.f32 %v268_v17, %v159_v20  ;;  %v2667_v55 = vpop.f32.mrb[3].mxu0 }
  0xf4   :  { %v169_v42 = vadd.f32 %v2617_v19, %v2667_v55 }
  0xf5   :  { %v272_v22 = vmul.f32 0.5, %v271_v21  ;;  %v2701_v21 = vld [vmem:[#allocation2 + $0x80] ss:$0 sm:$0xff] }
  0xf6   :  { %v2669_v56 = vpop.f32.mrb[4].mxu0 }
  0xf7   :  { %2456 = vtanh.f32 %v272_v22  ;;  %v2671_v57 = vpop.f32.mrb[5].mxu0 }
  0xfa   :  { %v2673_v58 = vpop.f32.mrb[6].mxu0 }
  0xfb   :  { %v2675_v59 = vpop.f32.mrb[7].mxu0 }
 0x101   :  { %v2457_v23 = vpop.eup %2456 }
 0x102   :  { %v274_v24 = vadd.f32 1.0, %v2457_v23 }
 0x104   :  { %v275_v25 = vmul.f32 0.5, %v274_v24 }
 0x106   :  { %v287_v49 = vsub.f32 1.0, %v275_v25  ;;  %v293_v51 = vmul.f32 0.0, %v275_v25 }
 0x165   :  { %v278_v26 = vpop.permute.xlu0 %277 }
 0x166   :  { %v280_v27 = vmul.f32 %v278_v26, %v275_v25 }
 0x168   :  { %282 = vrot.lane.b32.xlu0 %v280_v27, %s2554_s26 }
 0x1da   :  { %v283_v28 = vpop.permute.xlu0 %282 }
 0x1db   :  { %v285_v29 = vadd.f32 %v283_v28, %v159_v20 }
 0x1dd   :  { %2458 = vtanh.f32 %v285_v29 }
 0x1e7   :  { %v2459_v45 = vpop.eup %2458 }
 0x1e8   :  { %289 = vrot.lane.b32.xlu1 %v2459_v45, %s2555_s11 }
 0x25a   :  { %v290_v50 = vpop.permute.xlu1 %289 }
 0x25b   :  { %v292_v52 = vmul.f32 %v290_v50, %v287_v49 }
 0x25d   :  { %v294_v53 = vadd.f32 %v293_v51, %v292_v52 }
 0x25f   :  { %296 = vrot.lane.b32.xlu1 %v294_v53, %s2555_s11 }
 0x2d1   :  { %v297_v60 = vpop.permute.xlu1 %296 }
 0x2d2   :  { %v299_v61 = vsel %vm197_vm2, %v297_v60, 0.0  ;;  %2081 = vmatmul.mubr.msk.f32.vlgmr.msra.gmra.mrb[2].mxu1 %vm197_vm2, %v297_v60 }
 0x2d3   :  { %2070 = vmatmul.mubr.msk.f32.vlgmr.msra.gmra.mrb[8].mxu0 %vm300_vm3, %v299_v61  ;;  %2323 = vmatpush3.bf16.msra.mxu1 %v2624_v33 }
 0x2d4   :  { %2335 = vmatpush3.bf16.msra.mxu0 %v2587_v5  ;;  %2110 = vmatprep.mubr.msk.f32.mxu0 %vm2552_vm0, %v2553_v1 }
 0x2d5   :  { %2336 = vmatprep.subr.bf16.mxu0 %v2551_v0  ;;  %2324 = vmatprep.subr.bf16.mxu1 %v2551_v0 }
 0x2d6   :  { %2099 = vmatprep.mubr.msk.f32.mxu1 %vm2552_vm0, %v2553_v1 }
 0x2d7   :  { %2326 = vmatpush3.bf16.msra.mxu1 %v2635_v38 }
 0x2d8   :  { %2338 = vmatpush3.bf16.msra.mxu0 %v2593_v11  ;;  %2327 = vmatprep.subr.bf16.mxu1 %v2551_v0 }
 0x2d9   :  { %2339 = vmatprep.subr.bf16.mxu0 %v2551_v0 }
 0x2db   :  { %2329 = vmatpush3.bf16.msra.mxu1 %v2647_v43 }
 0x2dc   :  { %2330 = vmatprep.subr.bf16.mxu1 %v2551_v0 }
 0x2df   :  { %2332 = vmatpush3.bf16.msra.mxu1 %v2657_v48 }
 0x2e0   :  { %2351 = vmatprep.subr.bf16.mxu1 %v2551_v0 }
 0x3a5   :  { %v465_v62 = vpop.f32.mrb[2].mxu1 }
 0x3a6   :  { %v466_v63 = vadd.f32 %v2613_v14, %v465_v62  ;;  %v370_v2 = vpop.f32.mrb[8].mxu0  ;;  %v2082_v3 = vpop.f32.mrb[3].mxu1 }
 0x3a7   :  { %v2071_v4 = vpop.f32.mrb[9].mxu0  ;;  %v371_v13 = vadd.f32 %v2701_v21, %v370_v2 }
 0x3a8   :  { %475 = vrot.lane.b32.xlu0 %v466_v63, %s2554_s26  ;;  %v469_v7 = vadd.f32 %v466_v63, %v164_v6 }
 0x3a9   :  { %v374_v22 = vmul.f32 0.5, %v371_v13 }
 0x3aa   :  { %v470_v8 = vmul.f32 0.5, %v469_v7 }
 0x3ac   :  { %2460 = vtanh.f32 %v470_v8 }
 0x3b6   :  { %v2461_v9 = vpop.eup %2460 }
 0x3b7   :  { %v472_v10 = vadd.f32 1.0, %v2461_v9 }
 0x3b9   :  { %v473_v12 = vmul.f32 0.5, %v472_v10 }
 0x3bb   :  { %v485_v24 = vsub.f32 1.0, %v473_v12  ;;  %v491_v26 = vmul.f32 %v473_v12, %v294_v53 }
 0x41a   :  { %v476_v15 = vpop.permute.xlu0 %475 }
 0x41b   :  { %v478_v16 = vmul.f32 %v476_v15, %v473_v12 }
 0x41d   :  { %480 = vrot.lane.b32.xlu1 %v478_v16, %s2554_s26 }
 0x48f   :  { %v481_v17 = vpop.permute.xlu1 %480 }
 0x490   :  { %v483_v18 = vadd.f32 %v481_v17, %v164_v6 }
 0x492   :  { %2462 = vtanh.f32 %v483_v18 }
 0x493   :  { %2464 = vtanh.f32 %v374_v22 }
 0x49c   :  { %v2463_v20 = vpop.eup %2462 }
 0x49d   :  { %487 = vrot.lane.b32.xlu0 %v2463_v20, %s2555_s11  ;;  %v2465_v23 = vpop.eup %2464 }
 0x49e   :  { %v376_v28 = vadd.f32 1.0, %v2465_v23 }
 0x4a0   :  { %v377_v31 = vmul.f32 0.5, %v376_v28 }
 0x4a1   :  { %379 = vrot.lane.b32.xlu0 %v371_v13, %s2556_s0 }
 0x4a2   :  { %v389_v52 = vsub.f32 1.0, %v377_v31  ;;  %v395_v60 = vmul.f32 0.0, %v377_v31 }
 0x50f   :  { %v488_v25 = vpop.permute.xlu0 %487 }
 0x510   :  { %v490_v27 = vmul.f32 %v488_v25, %v485_v24 }
 0x512   :  { %v492_v29 = vadd.f32 %v491_v26, %v490_v27 }
 0x513   :  { %v380_v30 = vpop.permute.xlu0 %379 }
 0x514   :  { %494 = vrot.lane.b32.xlu1 %v492_v29, %s2555_s11  ;;  %v382_v32 = vmul.f32 %v380_v30, %v377_v31 }
 0x518   :  { %384 = vrot.lane.b32.xlu1 %v382_v32, %s2554_s26 }
 0x586   :  { %v495_v34 = vpop.permute.xlu1 %494 }
 0x587   :  { %2111 = vmatmul.mubr.msk.f32.vlgmr.msra.gmra.mrb[10].mxu0 %vm197_vm2, %v495_v34 }
 0x588   :  { %2341 = vmatpush3.bf16.msra.mxu0 %v2624_v33  ;;  %2129 = vmatprep.mubr.msk.f32.mxu0 %vm2552_vm0, %v2553_v1 }
 0x589   :  { %2342 = vmatprep.subr.bf16.mxu0 %v2551_v0 }
 0x58a   :  { %v385_v35 = vpop.permute.xlu1 %384 }
 0x58b   :  { %v387_v36 = vadd.f32 %v385_v35, %v371_v13 }
 0x58c   :  { %2344 = vmatpush3.bf16.msra.mxu0 %v2635_v38 }
 0x58d   :  { %2345 = vmatprep.subr.bf16.mxu0 %v2551_v0  ;;  %2466 = vtanh.f32 %v387_v36 }
 0x590   :  { %2347 = vmatpush3.bf16.msra.mxu0 %v2647_v43 }
 0x591   :  { %2348 = vmatprep.subr.bf16.mxu0 %v2551_v0 }
 0x594   :  { %2350 = vmatpush3.bf16.msra.mxu0 %v2657_v48 }
 0x595   :  { %2369 = vmatprep.subr.bf16.mxu0 %v2551_v0 }
 0x597   :  { %v2467_v41 = vpop.eup %2466 }
 0x65a   :  { %v662_v37 = vpop.f32.mrb[10].mxu0 }
 0x65b   :  { %v663_v39 = vadd.f32 %v2613_v14, %v662_v37  ;;  %v2112_v40 = vpop.f32.mrb[11].mxu0  ;;  %v174_v37 = vadd.f32 %v2665_v54, %v2617_v19 }
 0x65d   :  { %672 = vrot.lane.b32.xlu0 %v663_v39, %s2554_s26  ;;  %v666_v44 = vadd.f32 %v663_v39, %v169_v42 }
 0x65f   :  { %v667_v45 = vmul.f32 0.5, %v666_v44 }
 0x661   :  { %391 = vrot.lane.b32.xlu0 %v2467_v41, %s2555_s11  ;;  %2468 = vtanh.f32 %v667_v45 }
 0x66b   :  { %v2469_v46 = vpop.eup %2468 }
 0x66c   :  { %v669_v47 = vadd.f32 1.0, %v2469_v46 }
 0x66e   :  { %v670_v49 = vmul.f32 0.5, %v669_v47 }
 0x670   :  { %v682_v8 = vsub.f32 1.0, %v670_v49  ;;  %v688_v10 = vmul.f32 %v670_v49, %v492_v29 }
 0x6cf   :  { %v673_v50 = vpop.permute.xlu0 %672 }
 0x6d0   :  { %v675_v51 = vmul.f32 %v673_v50, %v670_v49 }
 0x6d2   :  { %677 = vrot.lane.b32.xlu1 %v675_v51, %s2554_s26 }
 0x6d3   :  { %v392_v53 = vpop.permute.xlu0 %391 }
 0x6d4   :  { %v394_v61 = vmul.f32 %v392_v53, %v389_v52 }
 0x6d6   :  { %v396_v62 = vadd.f32 %v395_v60, %v394_v61 }
 0x6d8   :  { %v497_v63 = vsel %vm197_vm2, %v495_v34, %v396_v62 }
 0x6d9   :  { %2100 = vmatmul.mubr.msk.f32.vlgmr.msra.gmra.mrb[4].mxu1 %vm300_vm3, %v497_v63 }
 0x6da   :  { %2353 = vmatpush3.bf16.msra.mxu1 %v2587_v5  ;;  %2140 = vmatprep.mubr.msk.f32.mxu1 %vm2552_vm0, %v2553_v1 }
 0x6db   :  { %2354 = vmatprep.subr.bf16.mxu1 %v2551_v0 }
 0x6de   :  { %2356 = vmatpush3.bf16.msra.mxu1 %v2593_v11 }
 0x6df   :  { %2357 = vmatprep.subr.bf16.mxu1 %v2551_v0 }
 0x744   :  { %v678_v55 = vpop.permute.xlu1 %677 }
 0x745   :  { %v680_v2 = vadd.f32 %v678_v55, %v169_v42 }
 0x747   :  { %2470 = vtanh.f32 %v680_v2 }
 0x751   :  { %v2471_v3 = vpop.eup %2470 }
 0x752   :  { %684 = vrot.lane.b32.xlu1 %v2471_v3, %s2555_s11 }
 0x7ac   :  { %v567_v4 = vpop.f32.mrb[4].mxu1 }
 0x7ad   :  { %v568_v6 = vadd.f32 %v2701_v21, %v567_v4  ;;  %v2101_v7 = vpop.f32.mrb[5].mxu1 }
 0x7af   :  { %576 = vrot.lane.b32.xlu1 %v568_v6, %s2556_s0  ;;  %v571_v16 = vmul.f32 0.5, %v568_v6 }
 0x7b1   :  { %2472 = vtanh.f32 %v571_v16 }
 0x7bb   :  { %v2473_v17 = vpop.eup %2472 }
 0x7bc   :  { %v573_v18 = vadd.f32 1.0, %v2473_v17 }
 0x7be   :  { %v574_v20 = vmul.f32 0.5, %v573_v18 }
 0x7c0   :  { %v586_v30 = vsub.f32 1.0, %v574_v20  ;;  %v592_v32 = vmul.f32 %v574_v20, %v396_v62 }
 0x7c4   :  { %v685_v9 = vpop.permute.xlu1 %684 }
 0x7c5   :  { %v687_v12 = vmul.f32 %v685_v9, %v682_v8 }
 0x7c7   :  { %v2736_v15 = vadd.f32 %v688_v10, %v687_v12 }
 0x7c9   :  { %691 = vrot.lane.b32.xlu0 %v2736_v15, %s2555_s11 }
 0x821   :  { %v577_v13 = vpop.permute.xlu1 %576 }
 0x822   :  { %v579_v22 = vmul.f32 %v577_v13, %v574_v20 }
 0x824   :  { %581 = vrot.lane.b32.xlu0 %v579_v22, %s2554_s26 }
 0x83b   :  { %v692_v23 = vpop.permute.xlu0 %691 }
 0x83c   :  { %2141 = vmatmul.mubr.msk.f32.vlgmr.msra.gmra.mrb[6].mxu1 %vm197_vm2, %v692_v23 }
 0x83d   :  { %2359 = vmatpush3.bf16.msra.mxu1 %v2624_v33  ;;  %2159 = vmatprep.mubr.msk.f32.mxu1 %vm2552_vm0, %v2553_v1 }
 0x83e   :  { %2360 = vmatprep.subr.bf16.mxu1 %v2551_v0 }
 0x841   :  { %2362 = vmatpush3.bf16.msra.mxu1 %v2635_v38 }
 0x842   :  { %2363 = vmatprep.subr.bf16.mxu1 %v2551_v0 }
 0x845   :  { %2365 = vmatpush3.bf16.msra.mxu1 %v2647_v43 }
 0x846   :  { %2366 = vmatprep.subr.bf16.mxu1 %v2551_v0 }
 0x849   :  { %2368 = vmatpush3.bf16.msra.mxu1 %v2657_v48 }
 0x84a   :  { %2387 = vmatprep.subr.bf16.mxu1 %v2551_v0 }
 0x896   :  { %v582_v24 = vpop.permute.xlu0 %581 }
 0x897   :  { %v584_v25 = vadd.f32 %v582_v24, %v568_v6 }
 0x899   :  { %2474 = vtanh.f32 %v584_v25  ;;  %v179_v25 = vadd.f32 %v2617_v19, %v2671_v57 }
 0x8a3   :  { %v2475_v26 = vpop.eup %2474 }
 0x8a4   :  { %588 = vrot.lane.b32.xlu0 %v2475_v26, %s2555_s11 }
 0x90f   :  { %v859_v27 = vpop.f32.mrb[6].mxu1 }
 0x910   :  { %v860_v28 = vadd.f32 %v2613_v14, %v859_v27  ;;  %v2142_v29 = vpop.f32.mrb[7].mxu1 }
 0x912   :  { %869 = vrot.lane.b32.xlu1 %v860_v28, %s2554_s26  ;;  %v863_v39 = vadd.f32 %v860_v28, %v174_v37 }
 0x914   :  { %v864_v40 = vmul.f32 0.5, %v863_v39 }
 0x916   :  { %v589_v31 = vpop.permute.xlu0 %588  ;;  %2476 = vtanh.f32 %v864_v40 }
 0x917   :  { %v591_v34 = vmul.f32 %v589_v31, %v586_v30 }
 0x919   :  { %v593_v35 = vadd.f32 %v592_v32, %v591_v34 }
 0x91b   :  { %v694_v36 = vsel %vm197_vm2, %v692_v23, %v593_v35 }
 0x91c   :  { %2130 = vmatmul.mubr.msk.f32.vlgmr.msra.gmra.mrb[12].mxu0 %vm300_vm3, %v694_v36 }
 0x91d   :  { %2371 = vmatpush3.bf16.msra.mxu0 %v2587_v5  ;;  %2170 = vmatprep.mubr.msk.f32.mxu0 %vm2552_vm0, %v2553_v1 }
 0x91e   :  { %2372 = vmatprep.subr.bf16.mxu0 %v2551_v0 }
 0x920   :  { %v2477_v41 = vpop.eup %2476 }
 0x921   :  { %2374 = vmatpush3.bf16.msra.mxu0 %v2593_v11  ;;  %v866_v42 = vadd.f32 1.0, %v2477_v41 }
 0x922   :  { %2375 = vmatprep.subr.bf16.mxu0 %v2551_v0 }
 0x923   :  { %v867_v44 = vmul.f32 0.5, %v866_v42 }
 0x925   :  { %v879_v61 = vsub.f32 1.0, %v867_v44  ;;  %v885_v63 = vmul.f32 %v867_v44, %v2736_v15 }
 0x984   :  { %v870_v45 = vpop.permute.xlu1 %869 }
 0x985   :  { %v872_v46 = vmul.f32 %v870_v45, %v867_v44 }
 0x987   :  { %874 = vrot.lane.b32.xlu1 %v872_v46, %s2554_s26 }
 0x9ef   :  { %v764_v47 = vpop.f32.mrb[12].mxu0 }
 0x9f0   :  { %v2131_v49 = vpop.f32.mrb[13].mxu0  ;;  %v765_v54 = vadd.f32 %v2701_v21, %v764_v47 }
 0x9f2   :  { %v768_v53 = vmul.f32 0.5, %v765_v54 }
 0x9f9   :  { %v875_v50 = vpop.permute.xlu1 %874 }
 0x9fa   :  { %v877_v51 = vadd.f32 %v875_v50, %v174_v37 }
 0x9fc   :  { %2478 = vtanh.f32 %v877_v51 }
 0x9fd   :  { %2480 = vtanh.f32 %v768_v53 }
 0xa06   :  { %v2479_v52 = vpop.eup %2478 }
 0xa07   :  { %881 = vrot.lane.b32.xlu0 %v2479_v52, %s2555_s11  ;;  %v2481_v60 = vpop.eup %2480 }
 0xa08   :  { %v770_v2 = vadd.f32 1.0, %v2481_v60 }
 0xa0a   :  { %v771_v6 = vmul.f32 0.5, %v770_v2 }
 0xa0b   :  { %773 = vrot.lane.b32.xlu0 %v765_v54, %s2556_s0 }
 0xa0c   :  { %v783_v15 = vsub.f32 1.0, %v771_v6  ;;  %v789_v17 = vmul.f32 %v771_v6, %v593_v35 }
 0xa79   :  { %v882_v62 = vpop.permute.xlu0 %881 }
 0xa7a   :  { %v884_v55 = vmul.f32 %v882_v62, %v879_v61 }
 0xa7c   :  { %v886_v3 = vadd.f32 %v885_v63, %v884_v55 }
 0xa7d   :  { %v774_v4 = vpop.permute.xlu0 %773 }
 0xa7e   :  { %888 = vrot.lane.b32.xlu1 %v886_v3, %s2555_s11  ;;  %v776_v7 = vmul.f32 %v774_v4, %v771_v6 }
 0xa82   :  { %778 = vrot.lane.b32.xlu1 %v776_v7, %s2554_s26 }
 0xaf0   :  { %v889_v8 = vpop.permute.xlu1 %888 }
 0xaf1   :  { %2171 = vmatmul.mubr.msk.f32.vlgmr.msra.gmra.mrb[14].mxu0 %vm197_vm2, %v889_v8 }
 0xaf2   :  { %2377 = vmatpush3.bf16.msra.mxu0 %v2624_v33  ;;  %2189 = vmatprep.mubr.msk.f32.mxu0 %vm2552_vm0, %v2553_v1 }
 0xaf3   :  { %2378 = vmatprep.subr.bf16.mxu0 %v2551_v0 }
 0xaf4   :  { %v779_v9 = vpop.permute.xlu1 %778 }
 0xaf5   :  { %v781_v10 = vadd.f32 %v779_v9, %v765_v54  ;;  %v184_v9 = vadd.f32 %v2669_v56, %v2617_v19 }
 0xaf6   :  { %2380 = vmatpush3.bf16.msra.mxu0 %v2635_v38 }
 0xaf7   :  { %2482 = vtanh.f32 %v781_v10  ;;  %2381 = vmatprep.subr.bf16.mxu0 %v2551_v0 }
 0xafa   :  { %2383 = vmatpush3.bf16.msra.mxu0 %v2647_v43 }
 0xafb   :  { %2384 = vmatprep.subr.bf16.mxu0 %v2551_v0 }
 0xafe   :  { %2386 = vmatpush3.bf16.msra.mxu0 %v2657_v48 }
 0xaff   :  { %2405 = vmatprep.subr.bf16.mxu0 %v2551_v0 }
 0xb01   :  { %v2483_v12 = vpop.eup %2482 }
 0xb02   :  { %785 = vrot.lane.b32.xlu0 %v2483_v12, %s2555_s11 }
 0xb74   :  { %v786_v16 = vpop.permute.xlu0 %785 }
 0xb75   :  { %v788_v18 = vmul.f32 %v786_v16, %v783_v15 }
 0xb77   :  { %v2784_v20 = vadd.f32 %v789_v17, %v788_v18 }
 0xb79   :  { %v891_v13 = vsel %vm197_vm2, %v889_v8, %v2784_v20 }
 0xb7a   :  { %2160 = vmatmul.mubr.msk.f32.vlgmr.msra.gmra.mrb[8].mxu1 %vm300_vm3, %v891_v13 }
 0xb7b   :  { %2389 = vmatpush3.bf16.msra.mxu1 %v2587_v5  ;;  %2200 = vmatprep.mubr.msk.f32.mxu1 %vm2552_vm0, %v2553_v1 }
 0xb7c   :  { %2390 = vmatprep.subr.bf16.mxu1 %v2551_v0 }
 0xb7f   :  { %2392 = vmatpush3.bf16.msra.mxu1 %v2593_v11 }
 0xb80   :  { %2393 = vmatprep.subr.bf16.mxu1 %v2551_v0 }
 0xbc4   :  { %v1056_v22 = vpop.f32.mrb[14].mxu0 }
 0xbc5   :  { %v1057_v23 = vadd.f32 %v2613_v14, %v1056_v22  ;;  %v2172_v24 = vpop.f32.mrb[15].mxu0 }
 0xbc7   :  { %1066 = vrot.lane.b32.xlu1 %v1057_v23, %s2554_s26  ;;  %v1060_v26 = vadd.f32 %v1057_v23, %v179_v25 }
 0xbc9   :  { %v1061_v27 = vmul.f32 0.5, %v1060_v26 }
 0xbcb   :  { %2484 = vtanh.f32 %v1061_v27 }
 0xbd5   :  { %v2485_v28 = vpop.eup %2484 }
 0xbd6   :  { %v1063_v29 = vadd.f32 1.0, %v2485_v28 }
 0xbd8   :  { %v1064_v30 = vmul.f32 0.5, %v1063_v29 }
 0xbda   :  { %v1076_v42 = vsub.f32 1.0, %v1064_v30  ;;  %v1082_v45 = vmul.f32 %v1064_v30, %v886_v3 }
 0xc39   :  { %v1067_v31 = vpop.permute.xlu1 %1066 }
 0xc3a   :  { %v1069_v32 = vmul.f32 %v1067_v31, %v1064_v30 }
 0xc3c   :  { %1071 = vrot.lane.b32.xlu0 %v1069_v32, %s2554_s26 }
 0xc4d   :  { %v961_v34 = vpop.f32.mrb[8].mxu1 }
 0xc4e   :  { %v2161_v35 = vpop.f32.mrb[9].mxu1  ;;  %v962_v57 = vadd.f32 %v2701_v21, %v961_v34 }
 0xc50   :  { %v965_v40 = vmul.f32 0.5, %v962_v57 }
 0xcae   :  { %v1072_v36 = vpop.permute.xlu0 %1071 }
 0xcaf   :  { %v1074_v37 = vadd.f32 %v1072_v36, %v179_v25 }
 0xcb1   :  { %2486 = vtanh.f32 %v1074_v37 }
 0xcb2   :  { %2488 = vtanh.f32 %v965_v40 }
 0xcbb   :  { %v2487_v39 = vpop.eup %2486 }
 0xcbc   :  { %1078 = vrot.lane.b32.xlu1 %v2487_v39, %s2555_s11  ;;  %v2489_v41 = vpop.eup %2488 }
 0xcbd   :  { %v967_v47 = vadd.f32 1.0, %v2489_v41 }
 0xcbf   :  { %v968_v51 = vmul.f32 0.5, %v967_v47 }
 0xcc0   :  { %970 = vrot.lane.b32.xlu1 %v962_v57, %s2556_s0 }
 0xcc1   :  { %v980_v62 = vsub.f32 1.0, %v968_v51  ;;  %v986_v55 = vmul.f32 %v968_v51, %v2784_v20 }
 0xd2e   :  { %v1079_v44 = vpop.permute.xlu1 %1078 }
 0xd2f   :  { %v1081_v46 = vmul.f32 %v1079_v44, %v1076_v42 }
 0xd31   :  { %v2803_v49 = vadd.f32 %v1082_v45, %v1081_v46 }
 0xd32   :  { %v971_v50 = vpop.permute.xlu1 %970 }
 0xd33   :  { %1085 = vrot.lane.b32.xlu0 %v2803_v49, %s2555_s11  ;;  %v973_v52 = vmul.f32 %v971_v50, %v968_v51 }
 0xd37   :  { %975 = vrot.lane.b32.xlu0 %v973_v52, %s2554_s26 }
 0xda5   :  { %v1086_v54 = vpop.permute.xlu0 %1085 }
 0xda6   :  { %2201 = vmatmul.mubr.msk.f32.vlgmr.msra.gmra.mrb[10].mxu1 %vm197_vm2, %v1086_v54 }
 0xda7   :  { %2395 = vmatpush3.bf16.msra.mxu1 %v2624_v33  ;;  %2219 = vmatprep.mubr.msk.f32.mxu1 %vm2552_vm0, %v2553_v1 }
 0xda8   :  { %2396 = vmatprep.subr.bf16.mxu1 %v2551_v0 }
 0xda9   :  { %v976_v53 = vpop.permute.xlu0 %975 }
 0xdaa   :  { %v978_v60 = vadd.f32 %v976_v53, %v962_v57 }
 0xdab   :  { %2398 = vmatpush3.bf16.msra.mxu1 %v2635_v38 }
 0xdac   :  { %2490 = vtanh.f32 %v978_v60  ;;  %2399 = vmatprep.subr.bf16.mxu1 %v2551_v0 }
 0xdaf   :  { %2401 = vmatpush3.bf16.msra.mxu1 %v2647_v43 }
 0xdb0   :  { %2402 = vmatprep.subr.bf16.mxu1 %v2551_v0 }
 0xdb3   :  { %2404 = vmatpush3.bf16.msra.mxu1 %v2657_v48 }
 0xdb4   :  { %2423 = vmatprep.subr.bf16.mxu1 %v2551_v0 }
 0xdb6   :  { %v2491_v61 = vpop.eup %2490 }
 0xdb7   :  { %982 = vrot.lane.b32.xlu1 %v2491_v61, %s2555_s11 }
 0xe29   :  { %v983_v63 = vpop.permute.xlu1 %982 }
 0xe2a   :  { %v985_v2 = vmul.f32 %v983_v63, %v980_v62 }
 0xe2c   :  { %v2821_v3 = vadd.f32 %v986_v55, %v985_v2 }
 0xe2e   :  { %v1088_v4 = vsel %vm197_vm2, %v1086_v54, %v2821_v3 }
 0xe2f   :  { %2190 = vmatmul.mubr.msk.f32.vlgmr.msra.gmra.mrb[16].mxu0 %vm300_vm3, %v1088_v4 }
 0xe30   :  { %2407 = vmatpush3.bf16.msra.mxu0 %v2587_v5  ;;  %2230 = vmatprep.mubr.msk.f32.mxu0 %vm2552_vm0, %v2553_v1 }
 0xe31   :  { %2408 = vmatprep.subr.bf16.mxu0 %v2551_v0 }
 0xe34   :  { %2410 = vmatpush3.bf16.msra.mxu0 %v2593_v11 }
 0xe35   :  { %2411 = vmatprep.subr.bf16.mxu0 %v2551_v0 }
 0xe79   :  { %v1253_v6 = vpop.f32.mrb[10].mxu1 }
 0xe7a   :  { %v1254_v7 = vadd.f32 %v2613_v14, %v1253_v6  ;;  %v2202_v8 = vpop.f32.mrb[11].mxu1 }
 0xe7c   :  { %1263 = vrot.lane.b32.xlu0 %v1254_v7, %s2554_s26  ;;  %v1257_v10 = vadd.f32 %v1254_v7, %v184_v9 }
 0xe7e   :  { %v1258_v12 = vmul.f32 0.5, %v1257_v10 }
 0xe80   :  { %2492 = vtanh.f32 %v1258_v12 }
 0xe8a   :  { %v2493_v15 = vpop.eup %2492 }
 0xe8b   :  { %v1260_v16 = vadd.f32 1.0, %v2493_v15 }
 0xe8d   :  { %v1261_v17 = vmul.f32 0.5, %v1260_v16 }
 0xe8f   :  { %v1273_v32 = vsub.f32 1.0, %v1261_v17  ;;  %v1279_v35 = vmul.f32 %v1261_v17, %v2803_v49 }
 0xeee   :  { %v1264_v18 = vpop.permute.xlu0 %1263 }
 0xeef   :  { %v1266_v20 = vmul.f32 %v1264_v18, %v1261_v17 }
 0xef1   :  { %1268 = vrot.lane.b32.xlu1 %v1266_v20, %s2554_s26 }
 0xf02   :  { %v1158_v13 = vpop.f32.mrb[16].mxu0 }
 0xf03   :  { %v1159_v22 = vadd.f32 %v2701_v21, %v1158_v13  ;;  %v2191_v23 = vpop.f32.mrb[17].mxu0 }
 0xf05   :  { %1167 = vrot.lane.b32.xlu1 %v1159_v22, %s2556_s0  ;;  %v1162_v24 = vmul.f32 0.5, %v1159_v22 }
 0xf07   :  { %2494 = vtanh.f32 %v1162_v24 }
 0xf11   :  { %v2495_v56 = vpop.eup %2494 }
 0xf12   :  { %v1164_v28 = vadd.f32 1.0, %v2495_v56 }
 0xf14   :  { %v1165_v29 = vmul.f32 0.5, %v1164_v28 }
 0xf16   :  { %v1177_v42 = vsub.f32 1.0, %v1165_v29  ;;  %v1183_v45 = vmul.f32 %v1165_v29, %v2821_v3 }
 0xf63   :  { %v1269_v25 = vpop.permute.xlu1 %1268 }
 0xf64   :  { %v1271_v26 = vadd.f32 %v1269_v25, %v184_v9 }
 0xf66   :  { %2496 = vtanh.f32 %v1271_v26 }
 0xf70   :  { %v2497_v27 = vpop.eup %2496 }
 0xf71   :  { %1275 = vrot.lane.b32.xlu0 %v2497_v27, %s2555_s11 }
 0xf77   :  { %v1168_v30 = vpop.permute.xlu1 %1167 }
 0xf78   :  { %v1170_v31 = vmul.f32 %v1168_v30, %v1165_v29 }
 0xf7a   :  { %1172 = vrot.lane.b32.xlu1 %v1170_v31, %s2554_s26 }
 0xfe3   :  { %v1276_v34 = vpop.permute.xlu0 %1275 }
 0xfe4   :  { %v1278_v36 = vmul.f32 %v1276_v34, %v1273_v32 }
 0xfe6   :  { %v2842_v37 = vadd.f32 %v1279_v35, %v1278_v36 }
 0xfe8   :  { %1282 = vrot.lane.b32.xlu0 %v2842_v37, %s2555_s11 }
 0xfec   :  { %v1173_v39 = vpop.permute.xlu1 %1172 }
 0xfed   :  { %v1175_v57 = vadd.f32 %v1173_v39, %v1159_v22 }
 0xfef   :  { %2498 = vtanh.f32 %v1175_v57 }
 0xff9   :  { %v2499_v40 = vpop.eup %2498 }
 0xffa   :  { %1179 = vrot.lane.b32.xlu0 %v2499_v40, %s2555_s11 }
0x105a   :  { %v1283_v41 = vpop.permute.xlu0 %1282 }
0x105b   :  { %2231 = vmatmul.mubr.msk.f32.vlgmr.msra.gmra.mrb[18].mxu0 %vm197_vm2, %v1283_v41 }
0x105c   :  { %2413 = vmatpush3.bf16.msra.mxu0 %v2624_v33  ;;  %2249 = vmatprep.mubr.msk.f32.mxu0 %vm2552_vm0, %v2553_v1 }
0x105d   :  { %2414 = vmatprep.subr.bf16.mxu0 %v2551_v0 }
0x1060   :  { %2416 = vmatpush3.bf16.msra.mxu0 %v2635_v38 }
0x1061   :  { %2417 = vmatprep.subr.bf16.mxu0 %v2551_v0 }
0x1064   :  { %2419 = vmatpush3.bf16.msra.mxu0 %v2647_v43 }
0x1065   :  { %2420 = vmatprep.subr.bf16.mxu0 %v2551_v0 }
0x1068   :  { %2422 = vmatpush3.bf16.msra.mxu0 %v2657_v48 }
0x1069   :  { %2441 = vmatprep.subr.bf16.mxu0 %v2551_v0 }
0x106c   :  { %v1180_v44 = vpop.permute.xlu0 %1179 }
0x106d   :  { %v1182_v46 = vmul.f32 %v1180_v44, %v1177_v42 }
0x106f   :  { %v1184_v47 = vadd.f32 %v1183_v45, %v1182_v46 }
0x1071   :  { %v1285_v49 = vsel %vm197_vm2, %v1283_v41, %v1184_v47 }
0x1072   :  { %2220 = vmatmul.mubr.msk.f32.vlgmr.msra.gmra.mrb[12].mxu1 %vm300_vm3, %v1285_v49 }
0x1073   :  { %2425 = vmatpush3.bf16.msra.mxu1 %v2587_v5  ;;  %2260 = vmatprep.mubr.msk.f32.mxu1 %vm2552_vm0, %v2553_v1  ;;  %v189_v5 = vadd.f32 %v2617_v19, %v2675_v59 }
0x1074   :  { %2426 = vmatprep.subr.bf16.mxu1 %v2551_v0 }
0x1077   :  { %2428 = vmatpush3.bf16.msra.mxu1 %v2593_v11 }
0x1078   :  { %2429 = vmatprep.subr.bf16.mxu1 %v2551_v0 }
0x112e   :  { %v1450_v50 = vpop.f32.mrb[18].mxu0 }
0x112f   :  { %v1451_v51 = vadd.f32 %v2613_v14, %v1450_v50  ;;  %v2232_v52 = vpop.f32.mrb[19].mxu0 }
0x1131   :  { %1460 = vrot.lane.b32.xlu1 %v1451_v51, %s2554_s26  ;;  %v1454_v61 = vadd.f32 %v1451_v51, %v189_v5 }
0x1133   :  { %v1455_v62 = vmul.f32 0.5, %v1454_v61 }
0x1135   :  { %2500 = vtanh.f32 %v1455_v62 }
0x113f   :  { %v2501_v11 = vpop.eup %2500 }
0x1140   :  { %v1457_v63 = vadd.f32 1.0, %v2501_v11 }
0x1142   :  { %v1458_v55 = vmul.f32 0.5, %v1457_v63 }
0x1144   :  { %v1470_v20 = vsub.f32 1.0, %v1458_v55  ;;  %v1476_v22 = vmul.f32 %v1458_v55, %v2842_v37 }
0x1145   :  { %v1355_v54 = vpop.f32.mrb[12].mxu1 }
0x1146   :  { %v1356_v53 = vadd.f32 %v2701_v21, %v1355_v54  ;;  %v2221_v60 = vpop.f32.mrb[13].mxu1 }
0x1148   :  { %1364 = vrot.lane.b32.xlu1 %v1356_v53, %s2556_s0  ;;  %v1359_v3 = vmul.f32 0.5, %v1356_v53 }
0x114a   :  { %2502 = vtanh.f32 %v1359_v3 }
0x1154   :  { %v2503_v6 = vpop.eup %2502 }
0x1155   :  { %v1361_v7 = vadd.f32 1.0, %v2503_v6 }
0x1157   :  { %v1362_v8 = vmul.f32 0.5, %v1361_v7 }
0x1159   :  { %v1374_v26 = vsub.f32 1.0, %v1362_v8  ;;  %v1380_v27 = vmul.f32 %v1362_v8, %v1184_v47 }
0x11a3   :  { %v1461_v2 = vpop.permute.xlu1 %1460 }
0x11a4   :  { %v1463_v4 = vmul.f32 %v1461_v2, %v1458_v55 }
0x11a6   :  { %1465 = vrot.lane.b32.xlu0 %v1463_v4, %s2554_s26 }
0x11ba   :  { %v1365_v9 = vpop.permute.xlu1 %1364 }
0x11bb   :  { %v1367_v10 = vmul.f32 %v1365_v9, %v1362_v8 }
0x11bd   :  { %1369 = vrot.lane.b32.xlu1 %v1367_v10, %s2554_s26 }
0x1218   :  { %v1466_v59 = vpop.permute.xlu0 %1465 }
0x1219   :  { %v1468_v12 = vadd.f32 %v1466_v59, %v189_v5 }
0x121b   :  { %2504 = vtanh.f32 %v1468_v12 }
0x1225   :  { %v2505_v15 = vpop.eup %2504 }
0x1226   :  { %1472 = vrot.lane.b32.xlu0 %v2505_v15, %s2555_s11 }
0x122f   :  { %v1370_v16 = vpop.permute.xlu1 %1369 }
0x1230   :  { %v1372_v17 = vadd.f32 %v1370_v16, %v1356_v53 }
0x1232   :  { %2506 = vtanh.f32 %v1372_v17 }
0x123c   :  { %v2507_v18 = vpop.eup %2506 }
0x123d   :  { %1376 = vrot.lane.b32.xlu1 %v2507_v18, %s2555_s11  ;;  %v58_v18 = vld [vmem:[#allocation2 + $0x88] sm:$0xff] }
0x1298   :  { %v1473_v13 = vpop.permute.xlu0 %1472 }
0x1299   :  { %v1475_v23 = vmul.f32 %v1473_v13, %v1470_v20  ;;  %v59_v20 = vld [vmem:[#allocation2 + $0x90] sm:$0xff]  ;;  %v60_v13 = vld [vmem:[#allocation2 + $0x98] sm:$0xff] }
0x129b   :  { %v1477_v24 = vadd.f32 %v1476_v22, %v1475_v23  ;;  %v2442_v22 = vpack.c.bf16 %v59_v20, %v58_v18 }
0x129d   :  { %1479 = vrot.lane.b32.xlu0 %v1477_v24, %s2555_s11 }
0x12af   :  { %v1377_v25 = vpop.permute.xlu1 %1376 }
0x12b0   :  { %v1379_v56 = vmul.f32 %v1377_v25, %v1374_v26 }
0x12b2   :  { %v1381_v28 = vadd.f32 %v1380_v27, %v1379_v56 }
0x130f   :  { %v1480_v29 = vpop.permute.xlu0 %1479 }
0x1310   :  { %v1482_v30 = vsel %vm197_vm2, %v1480_v29, %v1381_v28  ;;  %2261 = vmatmul.mubr.msk.f32.vlgmr.msra.gmra.mrb[14].mxu1 %vm197_vm2, %v1480_v29 }
0x1311   :  { %2250 = vmatmul.mubr.msk.f32.vlgmr.msra.gmra.mrb[20].mxu0 %vm300_vm3, %v1482_v30  ;;  %2431 = vmatpush3.bf16.msra.mxu1 %v2624_v33  ;;  %v1897_v30 = vld [vmem:[#allocation2 + $0xa8] ss:$0 sm:$0xff] }
0x1312   :  { %2432 = vmatprep.subr.bf16.mxu1 %v2551_v0  ;;  %2279 = vmatprep.mubr.msk.f32.mxu1 %vm2552_vm0, %v2553_v1 }
0x1313   :  { %2290 = vmatprep.mubr.msk.f32.mxu0 %vm2552_vm0, %v2553_v1  ;;  %v194_v1 = vadd.f32 %v2673_v58, %v2617_v19  ;;  %2443 = vmatpush3.bf16.msra.mxu0 %v2442_v22 }
0x1314   :  { %2444 = vmatprep.subr.bf16.mxu0 %v2551_v0 }
0x1315   :  { %2434 = vmatpush3.bf16.msra.mxu1 %v2635_v38 }
0x1316   :  { %2435 = vmatprep.subr.bf16.mxu1 %v2551_v0 }
0x1319   :  { %2437 = vmatpush3.bf16.msra.mxu1 %v2647_v43 }
0x131a   :  { %2438 = vmatprep.subr.bf16.mxu1 %v2551_v0 }
0x131d   :  { %2440 = vmatpush3.bf16.msra.mxu1 %v2657_v48 }
0x13e3   :  { %v1647_v31 = vpop.f32.mrb[14].mxu1 }
0x13e4   :  { %v1648_v33 = vadd.f32 %v2613_v14, %v1647_v31  ;;  %v1552_v32 = vpop.f32.mrb[20].mxu0  ;;  %v2262_v34 = vpop.f32.mrb[15].mxu1 }
0x13e5   :  { %v1553_v35 = vadd.f32 %v2701_v21, %v1552_v32  ;;  %v2251_v36 = vpop.f32.mrb[21].mxu0 }
0x13e6   :  { %1657 = vrot.lane.b32.xlu0 %v1648_v33, %s2554_s26  ;;  %v1651_v38 = vadd.f32 %v1648_v33, %v194_v1 }
0x13e7   :  { %1561 = vrot.lane.b32.xlu1 %v1553_v35, %s2556_s0  ;;  %v1556_v37 = vmul.f32 0.5, %v1553_v35 }
0x13e8   :  { %v1652_v43 = vmul.f32 0.5, %v1651_v38 }
0x13ea   :  { %2508 = vtanh.f32 %v1652_v43 }
0x13eb   :  { %2510 = vtanh.f32 %v1556_v37 }
0x13f4   :  { %v2509_v48 = vpop.eup %2508 }
0x13f5   :  { %v2511_v39 = vpop.eup %2510  ;;  %v1654_v14 = vadd.f32 1.0, %v2509_v48 }
0x13f6   :  { %v1558_v57 = vadd.f32 1.0, %v2511_v39 }
0x13f7   :  { %v1655_v40 = vmul.f32 0.5, %v1654_v14 }
0x13f8   :  { %v1559_v42 = vmul.f32 0.5, %v1558_v57 }
0x13f9   :  { %v1667_v52 = vsub.f32 1.0, %v1655_v40  ;;  %v1673_v53 = vmul.f32 %v1655_v40, %v1477_v24 }
0x13fa   :  { %v1571_v62 = vsub.f32 1.0, %v1559_v42  ;;  %v1577_v63 = vmul.f32 %v1559_v42, %v1381_v28 }
0x1458   :  { %v1658_v41 = vpop.permute.xlu0 %1657 }
0x1459   :  { %v1660_v44 = vmul.f32 %v1658_v41, %v1655_v40  ;;  %v1562_v45 = vpop.permute.xlu1 %1561 }
0x145a   :  { %v1564_v46 = vmul.f32 %v1562_v45, %v1559_v42 }
0x145b   :  { %1662 = vrot.lane.b32.xlu0 %v1660_v44, %s2554_s26 }
0x145c   :  { %1566 = vrot.lane.b32.xlu1 %v1564_v46, %s2554_s26 }
0x14cd   :  { %v1663_v19 = vpop.permute.xlu0 %1662 }
0x14ce   :  { %v1665_v58 = vadd.f32 %v1663_v19, %v194_v1  ;;  %v1567_v47 = vpop.permute.xlu1 %1566 }
0x14cf   :  { %v1569_v49 = vadd.f32 %v1567_v47, %v1553_v35 }
0x14d0   :  { %2512 = vtanh.f32 %v1665_v58 }
0x14d1   :  { %2514 = vtanh.f32 %v1569_v49 }
0x14da   :  { %v2513_v50 = vpop.eup %2512 }
0x14db   :  { %v2515_v51 = vpop.eup %2514  ;;  %1669 = vrot.lane.b32.xlu0 %v2513_v50, %s2555_s11 }
0x14dc   :  { %1573 = vrot.lane.b32.xlu1 %v2515_v51, %s2555_s11 }
0x154d   :  { %v1670_v54 = vpop.permute.xlu0 %1669 }
0x154e   :  { %v1672_v60 = vmul.f32 %v1670_v54, %v1667_v52  ;;  %v1574_v61 = vpop.permute.xlu1 %1573 }
0x154f   :  { %v1576_v11 = vmul.f32 %v1574_v61, %v1571_v62 }
0x1550   :  { %v1674_v5 = vadd.f32 %v1673_v53, %v1672_v60 }
0x1551   :  { %v1578_v55 = vadd.f32 %v1577_v63, %v1576_v11 }
0x1552   :  { %1676 = vrot.lane.b32.xlu0 %v1674_v5, %s2555_s11 }
0x15c4   :  { %v1677_v2 = vpop.permute.xlu0 %1676 }
0x15c5   :  { %v1679_v3 = vsel %vm197_vm2, %v1677_v2, %v1578_v55 }
0x15c6   :  { %2280 = vmatmul.mubr.msk.f32.vlgmr.msra.gmra.mrb[16].mxu1 %vm300_vm3, %v1679_v3 }
0x1699   :  { %v1749_v4 = vpop.f32.mrb[16].mxu1 }
0x169a   :  { %v1750_v6 = vadd.f32 %v2701_v21, %v1749_v4  ;;  %v2281_v7 = vpop.f32.mrb[17].mxu1  ;;  %v61_v21 = vld [vmem:[#allocation2 + $0xa0] sm:$0xff] }
0x169b   :  { %v2445_v23 = vpack.c.bf16 %v61_v21, %v60_v13 }
0x169c   :  { %1758 = vrot.lane.b32.xlu1 %v1750_v6, %s2556_s0  ;;  %v1753_v8 = vmul.f32 0.5, %v1750_v6 }
0x169d   :  { %2446 = vmatpush3.bf16.msra.mxu0 %v2445_v23 }
0x169e   :  { %2516 = vtanh.f32 %v1753_v8 }
0x16a8   :  { %v2517_v9 = vpop.eup %2516 }
0x16a9   :  { %v1755_v10 = vadd.f32 1.0, %v2517_v9 }
0x16ab   :  { %v1756_v59 = vmul.f32 0.5, %v1755_v10 }
0x16ad   :  { %v1768_v25 = vsub.f32 1.0, %v1756_v59  ;;  %v1774_v56 = vmul.f32 %v1756_v59, %v1578_v55 }
0x170e   :  { %v1759_v12 = vpop.permute.xlu1 %1758 }
0x170f   :  { %v1761_v15 = vmul.f32 %v1759_v12, %v1756_v59 }
0x1711   :  { %1763 = vrot.lane.b32.xlu0 %v1761_v15, %s2554_s26 }
0x1783   :  { %v1764_v16 = vpop.permute.xlu0 %1763 }
0x1784   :  { %v1766_v17 = vadd.f32 %v1764_v16, %v1750_v6 }
0x1786   :  { %2518 = vtanh.f32 %v1766_v17 }
0x1790   :  { %v2519_v24 = vpop.eup %2518 }
0x1791   :  { %1770 = vrot.lane.b32.xlu1 %v2519_v24, %s2555_s11 }
0x1803   :  { %v1771_v26 = vpop.permute.xlu1 %1770 }
0x1804   :  { %v1773_v27 = vmul.f32 %v1771_v26, %v1768_v25 }
0x1806   :  { %v1775_v28 = vadd.f32 %v1774_v56, %v1773_v27 }
0x1808   :  { %1781 = vrot.lane.b32.xlu0 %v1775_v28, %s2555_s11 }
0x187a   :  { %v1782_v29 = vpop.permute.xlu0 %1781 }
0x187b   :  { %2291 = vmatmul.mubr.msk.f32.vlgmr.msra.gmra.mrb[22].mxu0 %vm197_vm2, %v1782_v29 }
0x194e   :  { %v1851_v31 = vpop.f32.mrb[22].mxu0 }
0x194f   :  { %v1852_v33 = vadd.f32 %v1897_v30, %v1851_v31  ;;  %v2292_v32 = vpop.f32.mrb[23].mxu0 }
0x1951   :  { %1855 = vmax.xlane.f32.xlu1 %v1852_v33 }
0x19de   :  { %v1856_v0 = vpop.xlane.xlu1 %1855 }
0x19df   :  { %v1857_v34 = vsub.f32 %v1852_v33, %v1856_v0 }
0x19e1   :  { %v1858_v35 = vmul.f32 1.442695, %v1857_v34 }
0x19e3   :  { %2520 = vpow2.f32 %v1858_v35 }
0x19ed   :  { %v2521_v36 = vpop.eup %2520 }
0x19ee   :  { %1860 = vadd.xlane.f32.xlu0 %v2521_v36 }
0x1a7b   :  { %v1861_v1 = vpop.xlane.xlu0 %1860 }
0x1a7c   :  { %2522 = vlog2.f32 %v1861_v1 }
0x1a86   :  { %v2523_v38 = vpop.eup %2522 }
0x1a87   :  { %v1863_v43 = vmul.f32 0.6931472, %v2523_v38 }
0x1a89   :  { %v1864_v37 = vsub.f32 %v1857_v34, %v1863_v43 }
0x1a8b   :  { %1865 = vst [vmem:[%s2918_s2] sm:$0xff] %v1864_v37 }
0x1a8c   :  { %1870 = vsyncpa [#allocation3], 1 }

</bundles_post_ra>
